<compile_context>
chip_gen: v5e
topology: v5e:2x2
jax: 0.10.0
libtpu: 0.0.40
codegen_flags: <defaults>
</compile_context>

<pallas_src>
import math

import jax
import jax.numpy as jnp
from jax.experimental import pallas as pl
from jax.experimental.pallas import tpu as pltpu


def _make_attention_kernel(scale, has_mask, matmul_dtype):
    def kernel(*refs):
        if has_mask:
            q_ref, k_ref, v_ref, mask_ref, out_ref, attn_ref = refs
        else:
            q_ref, k_ref, v_ref, out_ref, attn_ref = refs

        q = q_ref[0] * scale              # (tq, D); 1/sqrt(d_k) folded into q
        k = k_ref[0]                      # (Lk, D)
        v = v_ref[0]                      # (Lk, Dv)
        if matmul_dtype is not None:      # optional fast-MXU path (bf16 in, f32 acc)
            q = q.astype(matmul_dtype)
            k = k.astype(matmul_dtype)
            v = v.astype(matmul_dtype)

        # scores = q @ k^T without materializing a transpose of k (contract last dims).
        scores = jax.lax.dot_general(
            q, k, (((1,), (1,)), ((), ())),
            preferred_element_type=jnp.float32)          # (tq, Lk) f32

        if has_mask:
            # masked_fill(mask, -1e18); nonzero == masked.
            scores = jnp.where(mask_ref[0] != 0, jnp.float32(-1e18), scores)

        # Numerically stable softmax along Lk, in f32.
        m = jnp.max(scores, axis=-1, keepdims=True)
        e = jnp.exp(scores - m)                          # values in [0, 1]

        # Unnormalized attn @ v first: the MXU starts as soon as exp finishes and the
        # normalization scales the small (tq, Dv) result instead of the (tq, Lk) probs.
        out_unnorm = jnp.dot(e.astype(v.dtype), v,
                             preferred_element_type=jnp.float32)   # (tq, Dv) f32

        s = jnp.sum(e, axis=-1, keepdims=True)
        inv = pl.reciprocal(s, approx=True)              # EUP slot (otherwise idle)
        inv = inv * (2.0 - s * inv)                      # one Newton step -> ~f32 accuracy

        attn_ref[0] = (e * inv).astype(attn_ref.dtype)
        out_ref[0] = (out_unnorm * inv).astype(out_ref.dtype)

    return kernel


def _round_up(x, m):
    return ((x + m - 1) // m) * m


def attention(q, k, v, mask=None, *, d_k=None, tq=128,
              matmul_dtype=None, attn_dtype=None):
    """Pallas implementation of Attention.forward(q, k, v, mask).

    q: (B, Lq, D), k: (B, Lk, D), v: (B, Lk, Dv), mask: (B, Lq, Lk) bool/int or None.
    Returns (out, attn) with out: (B, Lq, Dv), attn: (B, Lq, Lk).

    matmul_dtype: e.g. jnp.bfloat16 to run both MXU matmuls in bf16 (f32 accumulate).
    attn_dtype:   dtype of the returned attn matrix (defaults to q.dtype); bf16 halves
                  the dominant HBM write stream.
    """
    B, Lq, D = q.shape
    _, Lk, _ = k.shape
    Dv = v.shape[-1]
    if d_k is None:
        d_k = D  # config.model_size
    scale = 1.0 / math.sqrt(d_k)

    out_dtype = q.dtype
    if attn_dtype is None:
        attn_dtype = q.dtype

    # Query-tile rows: multiple of 8 sublanes, capped at the (sublane-rounded) Lq.
    # On v6e (256-wide MXU, 128 MiB VMEM) tq=256 is a reasonable bump, budget permitting.
    tq = min(_round_up(tq, 8), _round_up(Lq, 8))
    n_q_tiles = pl.cdiv(Lq, tq)          # ragged last tile handled by Pallas edge masking

    has_mask = mask is not None
    mask_in = None
    if has_mask:
        # Integer masks pass straight through (no extra HBM pass). Bool masks are widened
        # to int8 once for robust Mosaic lowering.
        mask_in = mask if jnp.issubdtype(mask.dtype, jnp.integer) else mask.astype(jnp.int8)

    # Inner grid axis = query tiles, so K/V block index is constant -> K/V stay resident.
    grid = (B, n_q_tiles)

    in_specs = [
        pl.BlockSpec((1, tq, D), lambda b, i: (b, i, 0)),     # q tile
        pl.BlockSpec((1, Lk, D), lambda b, i: (b, 0, 0)),     # K (resident across q tiles)
        pl.BlockSpec((1, Lk, Dv), lambda b, i: (b, 0, 0)),    # V (resident across q tiles)
    ]
    inputs = [q, k, v]
    if has_mask:
        in_specs.append(pl.BlockSpec((1, tq, Lk), lambda b, i: (b, i, 0)))
        inputs.append(mask_in)

    # Explicit VMEM budget: double-buffered blocks + rough softmax-temporary headroom.
    est = 2 * (tq * D * q.dtype.itemsize
               + Lk * D * k.dtype.itemsize
               + Lk * Dv * v.dtype.itemsize
               + tq * Dv * jnp.dtype(out_dtype).itemsize
               + tq * Lk * jnp.dtype(attn_dtype).itemsize)
    if has_mask:
        est += 2 * tq * Lk * mask_in.dtype.itemsize
    est += 4 * tq * Lk * 4                          # scores / e f32 temporaries + casts
    vmem_limit = int(min(max(32 * 2 ** 20, 1.25 * est), 64 * 2 ** 20))

    out, attn = pl.pallas_call(
        _make_attention_kernel(scale, has_mask, matmul_dtype),
        out_shape=(
            jax.ShapeDtypeStruct((B, Lq, Dv), out_dtype),
            jax.ShapeDtypeStruct((B, Lq, Lk), attn_dtype),
        ),
        grid_spec=pltpu.PrefetchScalarGridSpec(
            num_scalar_prefetch=0,
            grid=grid,
            in_specs=in_specs,
            out_specs=[
                pl.BlockSpec((1, tq, Dv), lambda b, i: (b, i, 0)),
                pl.BlockSpec((1, tq, Lk), lambda b, i: (b, i, 0)),
            ],
        ),
        compiler_params=pltpu.CompilerParams(
            # Both axes independent; on v7x the parallel axes are sharded over 2 TCs.
            dimension_semantics=("parallel", "parallel"),
            vmem_limit_bytes=vmem_limit,
        ),
    )(*inputs)
    return out, attn


def _reference(q, k, v, mask, d_k):
    hp = jax.lax.Precision.HIGHEST
    scores = jnp.einsum("bqd,bkd->bqk", q, k, precision=hp) / math.sqrt(d_k)
    if mask is not None:
        scores = jnp.where(mask, -1e18, scores)
    attn = jax.nn.softmax(scores, axis=-1)
    out = jnp.einsum("bqk,bkd->bqd", attn, v, precision=hp)
    return out, attn


if __name__ == "__main__":
    # Small but lane-dense shapes: batch=2, seq=256, d_k=d_v=128 (two query tiles/batch).
    B, Lq, Lk, D, Dv = 2, 256, 256, 128, 128
    key = jax.random.PRNGKey(0)
    kq, kk, kv, km = jax.random.split(key, 4)

    q = jax.random.normal(kq, (B, Lq, D), dtype=jnp.float32)
    k = jax.random.normal(kk, (B, Lk, D), dtype=jnp.float32)
    v = jax.random.normal(kv, (B, Lk, Dv), dtype=jnp.float32)
    # Deterministic boolean mask (~25% positions masked), matching torch masked_fill(mask).
    mask = jax.random.uniform(km, (B, Lq, Lk)) < 0.25

    # 1) Masked, full-precision path (contract-faithful).
    out, attn = attention(q, k, v, mask, d_k=D)
    jax.block_until_ready((out, attn))
    out_ref, attn_ref = _reference(q, k, v, mask, D)
    assert out.shape == (B, Lq, Dv) and attn.shape == (B, Lq, Lk)
    assert jnp.allclose(out, out_ref, atol=1e-4, rtol=1e-4), "out mismatch (masked)"
    assert jnp.allclose(attn, attn_ref, atol=1e-4, rtol=1e-4), "attn mismatch (masked)"

    # 2) No-mask path (mask input / DMA elided entirely).
    out2, attn2 = attention(q, k, v, None, d_k=D)
    jax.block_until_ready((out2, attn2))
    out2_ref, attn2_ref = _reference(q, k, v, None, D)
    assert jnp.allclose(out2, out2_ref, atol=1e-4, rtol=1e-4), "out mismatch (no mask)"
    assert jnp.allclose(attn2, attn2_ref, atol=1e-4, rtol=1e-4), "attn mismatch (no mask)"

    # 3) Ragged Lq (no wrapper-side padding or output slicing; Pallas masks edge blocks).
    Lq_r = 200
    q_r = q[:, :Lq_r]
    mask_r = mask[:, :Lq_r]
    out3, attn3 = attention(q_r, k, v, mask_r, d_k=D)
    jax.block_until_ready((out3, attn3))
    out3_ref, attn3_ref = _reference(q_r, k, v, mask_r, D)
    assert out3.shape == (B, Lq_r, Dv) and attn3.shape == (B, Lq_r, Lk)
    assert jnp.allclose(out3, out3_ref, atol=1e-4, rtol=1e-4), "out mismatch (ragged)"
    assert jnp.allclose(attn3, attn3_ref, atol=1e-4, rtol=1e-4), "attn mismatch (ragged)"

    # 4) Fast path: bf16 MXU inputs (f32 accumulate) + bf16 attn write-back.
    out4, attn4 = attention(q, k, v, mask, d_k=D,
                            matmul_dtype=jnp.bfloat16, attn_dtype=jnp.bfloat16)
    jax.block_until_ready((out4, attn4))
    assert attn4.dtype == jnp.bfloat16
    assert jnp.allclose(out4, out_ref, atol=1e-1, rtol=1e-1), "out mismatch (bf16 path)"
    assert jnp.allclose(attn4.astype(jnp.float32), attn_ref, atol=1e-1, rtol=1e-1), \
        "attn mismatch (bf16 path)"

    print("KERNEL_OK")
</pallas_src>

<mosaic_0001>
module attributes {stable_mosaic.version = 11 : i64} {
  func.func @kernel(%arg0: i32, %arg1: i32, %arg2: memref<1x128x128xf32, #tpu.memory_space<vmem>>, %arg3: memref<1x256x128xf32, #tpu.memory_space<vmem>>, %arg4: memref<1x256x128xf32, #tpu.memory_space<vmem>>, %arg5: memref<1x128x256xi8, #tpu.memory_space<vmem>>, %arg6: memref<1x128x128xf32, #tpu.memory_space<vmem>>, %arg7: memref<1x128x256xf32, #tpu.memory_space<vmem>>) attributes {dimension_semantics = [#tpu.dimension_semantics<parallel>, #tpu.dimension_semantics<parallel>], iteration_bounds = array<i64: 2, 2>, scalar_prefetch = 0 : i64, scratch_operands = 0 : i64, tpu.core_type = #tpu.core_type<tc>, window_params = [{transform_indices = @transform_0, window_bounds = array<i64: 1, 128, 128>}, {transform_indices = @transform_1, window_bounds = array<i64: 1, 256, 128>}, {transform_indices = @transform_2, window_bounds = array<i64: 1, 256, 128>}, {transform_indices = @transform_3, window_bounds = array<i64: 1, 128, 256>}, {transform_indices = @transform_4, window_bounds = array<i64: 1, 128, 128>}, {transform_indices = @transform_5, window_bounds = array<i64: 1, 128, 256>}]} {
    %c0 = arith.constant 0 : index
    %c0_0 = arith.constant 0 : index
    %c0_1 = arith.constant 0 : index
    %0 = vector.load %arg2[%c0, %c0_0, %c0_1] : memref<1x128x128xf32, #tpu.memory_space<vmem>>, vector<1x128x128xf32>
    %1 = vector.shape_cast %0 : vector<1x128x128xf32> to vector<128x128xf32>
    %cst = arith.constant 0.0883883461 : f32
    %2 = vector.broadcast %cst : f32 to vector<128x128xf32>
    %3 = arith.mulf %1, %2 : vector<128x128xf32>
    %c0_2 = arith.constant 0 : index
    %c0_3 = arith.constant 0 : index
    %c0_4 = arith.constant 0 : index
    %4 = vector.load %arg3[%c0_2, %c0_3, %c0_4] : memref<1x256x128xf32, #tpu.memory_space<vmem>>, vector<1x256x128xf32>
    %5 = vector.shape_cast %4 : vector<1x256x128xf32> to vector<256x128xf32>
    %c0_5 = arith.constant 0 : index
    %c0_6 = arith.constant 0 : index
    %c0_7 = arith.constant 0 : index
    %6 = vector.load %arg4[%c0_5, %c0_6, %c0_7] : memref<1x256x128xf32, #tpu.memory_space<vmem>>, vector<1x256x128xf32>
    %7 = vector.shape_cast %6 : vector<1x256x128xf32> to vector<256x128xf32>
    %cst_8 = arith.constant dense<0.000000e+00> : vector<128x256xf32>
    %8 = tpu.matmul %3, %5, %cst_8 {dimension_numbers = #tpu.dot_dimension_numbers<[1], [1], [0], [0], [0, 0, 1, 0], [], []>} : vector<128x128xf32>, vector<256x128xf32>, vector<128x256xf32> -> vector<128x256xf32>
    %c0_9 = arith.constant 0 : index
    %c0_10 = arith.constant 0 : index
    %c0_11 = arith.constant 0 : index
    %9 = vector.load %arg5[%c0_9, %c0_10, %c0_11] : memref<1x128x256xi8, #tpu.memory_space<vmem>>, vector<1x128x256xi8>
    %10 = vector.shape_cast %9 : vector<1x128x256xi8> to vector<128x256xi8>
    %c0_i8 = arith.constant 0 : i8
    %11 = vector.broadcast %c0_i8 : i8 to vector<128x256xi8>
    %12 = arith.cmpi ne, %10, %11 : vector<128x256xi8>
    %cst_12 = arith.constant -9.99999984E+17 : f32
    %13 = vector.broadcast %cst_12 : f32 to vector<128x256xf32>
    %14 = arith.select %12, %13, %8 : vector<128x256xi1>, vector<128x256xf32>
    %cst_13 = arith.constant dense<0xFF800000> : vector<128xf32>
    %15 = vector.multi_reduction <maximumf>, %14, %cst_13 [1] : vector<128x256xf32> to vector<128xf32>
    %16 = vector.shape_cast %15 : vector<128xf32> to vector<128x1xf32>
    %17 = vector.broadcast %16 : vector<128x1xf32> to vector<128x256xf32>
    %18 = arith.subf %14, %17 : vector<128x256xf32>
    %19 = math.exp %18 : vector<128x256xf32>
    %cst_14 = arith.constant dense<0.000000e+00> : vector<128x128xf32>
    %20 = tpu.matmul %19, %7, %cst_14 {dimension_numbers = #tpu.dot_dimension_numbers<[1], [0], [0], [1], [0, 0, 1, 1], [], []>} : vector<128x256xf32>, vector<256x128xf32>, vector<128x128xf32> -> vector<128x128xf32>
    %cst_15 = arith.constant dense<0.000000e+00> : vector<128xf32>
    %21 = vector.multi_reduction <add>, %19, %cst_15 [1] : vector<128x256xf32> to vector<128xf32>
    %22 = vector.shape_cast %21 : vector<128xf32> to vector<128x1xf32>
    %23 = tpu.reciprocal %22 {approx = true} : vector<128x1xf32> -> vector<128x1xf32>
    %24 = arith.mulf %22, %23 : vector<128x1xf32>
    %cst_16 = arith.constant 2.000000e+00 : f32
    %25 = vector.broadcast %cst_16 : f32 to vector<128x1xf32>
    %26 = arith.subf %25, %24 : vector<128x1xf32>
    %27 = arith.mulf %23, %26 : vector<128x1xf32>
    %28 = vector.broadcast %27 : vector<128x1xf32> to vector<128x256xf32>
    %29 = arith.mulf %19, %28 : vector<128x256xf32>
    %c0_17 = arith.constant 0 : index
    %c0_18 = arith.constant 0 : index
    %c0_19 = arith.constant 0 : index
    %30 = vector.load %arg7[%c0_17, %c0_18, %c0_19] : memref<1x128x256xf32, #tpu.memory_space<vmem>>, vector<1x128x256xf32>
    %31 = vector.shape_cast %30 : vector<1x128x256xf32> to vector<128x256xf32>
    %32 = vector.shape_cast %29 : vector<128x256xf32> to vector<1x128x256xf32>
    tpu.vector_store %arg7[%c0_17, %c0_18, %c0_19], %32 {strides = array<i32>} : memref<1x128x256xf32, #tpu.memory_space<vmem>>, vector<1x128x256xf32>,
    %33 = vector.broadcast %27 : vector<128x1xf32> to vector<128x128xf32>
    %34 = arith.mulf %20, %33 : vector<128x128xf32>
    %c0_20 = arith.constant 0 : index
    %c0_21 = arith.constant 0 : index
    %c0_22 = arith.constant 0 : index
    %35 = vector.load %arg6[%c0_20, %c0_21, %c0_22] : memref<1x128x128xf32, #tpu.memory_space<vmem>>, vector<1x128x128xf32>
    %36 = vector.shape_cast %35 : vector<1x128x128xf32> to vector<128x128xf32>
    %37 = vector.shape_cast %34 : vector<128x128xf32> to vector<1x128x128xf32>
    tpu.vector_store %arg6[%c0_20, %c0_21, %c0_22], %37 {strides = array<i32>} : memref<1x128x128xf32, #tpu.memory_space<vmem>>, vector<1x128x128xf32>,
    return
  }
  func.func @transform_0(%arg0: i32, %arg1: i32) -> (i32, i32, i32) {
    %c0_i32 = arith.constant 0 : i32
    %c0_i32_0 = arith.constant 0 : i32
    return %arg0, %arg1, %c0_i32 : i32, i32, i32
  }
  func.func @transform_1(%arg0: i32, %arg1: i32) -> (i32, i32, i32) {
    %c0_i32 = arith.constant 0 : i32
    %c0_i32_0 = arith.constant 0 : i32
    %c0_i32_1 = arith.constant 0 : i32
    return %arg0, %c0_i32, %c0_i32_0 : i32, i32, i32
  }
  func.func @transform_2(%arg0: i32, %arg1: i32) -> (i32, i32, i32) {
    %c0_i32 = arith.constant 0 : i32
    %c0_i32_0 = arith.constant 0 : i32
    %c0_i32_1 = arith.constant 0 : i32
    return %arg0, %c0_i32, %c0_i32_0 : i32, i32, i32
  }
  func.func @transform_3(%arg0: i32, %arg1: i32) -> (i32, i32, i32) {
    %c0_i32 = arith.constant 0 : i32
    %c0_i32_0 = arith.constant 0 : i32
    return %arg0, %arg1, %c0_i32 : i32, i32, i32
  }
  func.func @transform_4(%arg0: i32, %arg1: i32) -> (i32, i32, i32) {
    %c0_i32 = arith.constant 0 : i32
    %c0_i32_0 = arith.constant 0 : i32
    return %arg0, %arg1, %c0_i32 : i32, i32, i32
  }
  func.func @transform_5(%arg0: i32, %arg1: i32) -> (i32, i32, i32) {
    %c0_i32 = arith.constant 0 : i32
    %c0_i32_0 = arith.constant 0 : i32
    return %arg0, %arg1, %c0_i32 : i32, i32, i32
  }
}

</mosaic_0001>

<bundles_post_ra>
// kernel: tpu_custom_call.1
= control target key start
LH: loop header
LB: loop body
LE: loop exit
PB: predicated region body
PF: predicated region fallthrough
CT: control target
= control target key end

     0   :  { %s2957_s0 = inlined_call_operand.hbm [shape: f32[2,256,128], index: 0, kind: input, shape index: {}]   ;;  %s2958_s1 = inlined_call_operand.hbm [shape: f32[2,256,128], index: 1, kind: input, shape index: {}]   ;;  %s2959_s2 = inlined_call_operand.hbm [shape: f32[2,256,128], index: 2, kind: input, shape index: {}]   ;;  %s2960_s3 = inlined_call_operand.hbm [shape: s8[2,256,256], index: 3, kind: input, shape index: {}]   ;;  %s2961_s4 = inlined_call_operand.hbm [shape: f32[2,256,128], index: 4, kind: output, shape index: {0}]   ;;  %s2962_s5 = inlined_call_operand.hbm [shape: f32[2,256,256], index: 5, kind: output, shape index: {1}]  }
   0x1   :  { %2985 = sst [smem:[#allocation32_spill]] %s2957_s0 }
   0x2   :  { %2986 = sst [smem:[#allocation33_spill]] %s2958_s1 }
   0x3   :  { %2987 = sst [smem:[#allocation34_spill]] %s2959_s2 }
   0x4   :  { %2988 = sst [smem:[#allocation35_spill]] %s2961_s4 }
   0x5   :  { %2989 = sst [smem:[#allocation36_spill]] %s2962_s5 }
   0x6   :  { %11 = vsyncpa [#allocation3], 0 }
   0x7   :  { %13 = vsyncpa [#allocation3 + $0x1], 0 }
   0x8   :  { %14 = vsyncpa [#allocation6], 0 }
   0x9   :  { %16 = vsyncpa [#allocation6 + $0x1], 0 }
   0xa   :  { %17 = vsyncpa [#allocation9], 0 }
   0xb   :  { %19 = vsyncpa [#allocation9 + $0x1], 0 }
   0xc   :  { %20 = vsyncpa [#allocation4], 0 }
   0xd   :  { %22 = vsyncpa [#allocation4 + $0x1], 0 }
   0xe   :  { %23 = vsyncpa [#allocation12], 0 }
   0xf   :  { %25 = vsyncpa [#allocation12 + $0x1], 0  ;;  %s2163_s18 = smov 0   ;;  %s2165_s19 = smov 0  }
  0x10   :  { %s2167_s20 = smov 0   ;;  %s2169_s21 = smov 0  }
  0x11   :  { %s2171_s22 = smov 0   ;;  %s2173_s23 = smov 0  }
  0x12   :  { %s2175_s24 = smov 0   ;;  %s2177_s25 = smov 0  }
  0x13   :  { %s2179_s26 = smov 0   ;;  %s2181_s27 = smov 0  }
  0x14   :  { %s2183_s28 = smov 0  }
  0x15 LB: > { %2990 = sst [smem:[#allocation18_spill]] %s2090_s20  ;;  %s2217_s29 = sadd.s32 4294967295, %s2122_s28   ;;  %s2122_s28 = sphi %s2183_s28, %s31_s28   ;;  %s2118_s27 = sphi %s2181_s27, %s3043_s27   ;;  %s2114_s26 = sphi %s2179_s26, %s3042_s26   ;;  %s2110_s25 = sphi %s2177_s25, %s3041_s25   ;;  %s2106_s24 = sphi %s2175_s24, %s3040_s24   ;;  %s2102_s23 = sphi %s2173_s23, %s3033_s23   ;;  %s2098_s22 = sphi %s2171_s22, %s3039_s22   ;;  %s2094_s21 = sphi %s2169_s21, %s3038_s21   ;;  %s2090_s20 = sphi %s2167_s20, %s3031_s20   ;;  %s2086_s19 = sphi %s2165_s19, %s3037_s19   ;;  %s2082_s18 = sphi %s2163_s18, %s3036_s18  }
  0x16   : > { %2991 = sst [smem:[#allocation19_spill]] %s2094_s21  ;;  %p60_p0 = scmp.eq.s32.totalorder %s2122_s28, 0 }
  0x17   : > { %2992 = sst [smem:[#allocation20_spill]] %s2102_s23  ;;  %p66_p1 = scmp.eq.s32.totalorder %s2217_s29, 0 }
  0x18   : > { %2993 = sst [smem:[#allocation21_spill]] %s2106_s24  ;;  %p85_p2 = scmp.ne.s32.totalorder %s2090_s20, %s2086_s19 }
  0x19   : > { %2994 = sst [smem:[#allocation22_spill]] %s2110_s25  ;;  %p91_p3 = scmp.ne.s32.totalorder %s2086_s19, %s2082_s18 }
  0x1a   : > { %2995 = sst [smem:[#allocation23_spill]] %s2122_s28  ;;  %p2968_p4 = scmp.lt.s32.totalorder %s2122_s28, 4 }
  0x1b   : > { %p87_p5 = por %p85_p2, %p60_p0  ;;  %p2230_p6 = por %p91_p3, %p66_p1 }
  0x1c   : > { %s249_s7 = sand.u32 1, %s2122_s28   ;;  %s251_s8 = sand.u32 1, %s2090_s20  }
  0x1d   : > { %s2996_s6 = scalar_select %p2230_p6, 1, 0 }
  0x1e   : > { %s1580_s9 = sshll.u32 %s251_s8, 8  ;;  %s1609_s10 = sshll.u32 %s2118_s27, 8 }
  0x1f   : > { %2997 = sst [smem:[#allocation24_spill]] %s2996_s6  ;;  %s253_s14 = scalar_lea.vmem [#allocation5], %s1580_s9 }
  0x20   : > { %s2998_s1 = sld [smem:[#allocation33_spill]]  ;;  %s261_s15 = sshll.u32 %s253_s14, 4  ;;  %s262_s15 = int_to_ptr.vmem [resolvable:$true] %s261_s15 }
  0x21   : > { %p2242_p7 = pnand %p2968_p4, %p87_p5  ;;  %s3000_s2 = sld [smem:[#allocation34_spill]] }
  0x22   : > { %s2249_s14 = scalar_lea.sflag [#allocation6], %s249_s7  ;;  %s2965_s30 = smov 8  }
  0x23   : > { %p1591_p8 = scmp.ge.s32.totalorder %s2122_s28, 1  ;;  %p316_p9 = scmp.lt.s32.totalorder %s2122_s28, 5 }
  0x24   : > { %s43_s8 = sadd.s32 1, %s2118_s27  ;;  %p59_p12 = scmp.ne.s32.totalorder %s2102_s23, %s2098_s22 }
  0x25   : > { %p2264_p10 = pnand %p1591_p8, %p316_p9  ;;  %p65_p3 = scmp.ne.s32.totalorder %s2098_s22, %s2094_s21 }
  0x26   : > { %s258_s13 = scalar_lea.hbm %s2998_s1, %s1609_s10  ;;  %p2281_p13 = por %p60_p0, %p59_p12 }
  0x27   : > { %s259_s16 = sshll.u32 %s258_s13, 4  ;;  %s280_s11 = scalar_lea.hbm %s3000_s2, %s1609_s10  ;;  %s260_s16 = int_to_ptr.hbm [resolvable:$true] %s259_s16 }
  0x28   : > { %s281_s12 = sshll.u32 %s280_s11, 4  ;;  %s2963_s13 = smov 128   ;;  %s2257_s12 = int_to_ptr.hbm [resolvable:$true] %s281_s12 }
  0x29   : > { %1631 = dma.hbm_to_vmem [thread:$0]  (!%p2242_p7), %s260_s16, 4096, %s262_s15, %s2249_s14, %s2963_s13, %s2963_s13, %s2965_s30  }
  0x2a   : > { %s275_s10 = scalar_lea.vmem [#allocation7], %s1580_s9  ;;  %s1573_s15 = sadd.s32 4294967294, %s2122_s28  }
  0x2b   : > { %s2259_s18 = sshll.u32 %s275_s10, 4  ;;  %s40_s16 = sadd.s32 1, %s2114_s26 }
  0x2c   : > { %3001 = sst [smem:[#allocation25_spill]] %s2259_s18  ;;  %p41_p11 = scmp.ge.s32.totalorder %s40_s16, 2 }
  0x2d   : > { %s52_s9 = sadd.s32 1, %s2102_s23  ;;  %p171_p5 = scmp.eq.s32.totalorder %s2217_s29, 3 }
  0x2e   : > { %s3045_s16 = smov (%p41_p11, %s40_s16), 0  ;;  %s3047_s8 = smov (!%p41_p11, %s43_s8), %s2118_s27 }
  0x2f   : > { %3003 = sst [smem:[#allocation26_spill]] %s3045_s16  ;;  %s48_s11 = ssub.s32 %s2114_s26, %s3045_s16 }
  0x30   : > { %p45_p2 = scmp.ge.s32.totalorder %s3047_s8, 2  ;;  %p177_p8 = scmp.eq.s32.totalorder %s1573_s15, 3 }
  0x31   : > { %p2292_p9 = por %p66_p1, %p65_p3  ;;  %p2296_p11 = por %p171_p5, %p59_p12 }
  0x32   : > { %s3049_s8 = smov (%p45_p2, %s3047_s8), 0  ;;  %p2302_p0 = por %p177_p8, %p65_p3 }
  0x33   : > { %3005 = sst [smem:[#allocation27_spill]] %s3049_s8  ;;  %s47_s18 = ssub.s32 %s2118_s27, %s3049_s8 }
  0x34   : > { %s3007_s30 = scalar_select %p2296_p11, 1, 0 }
  0x35   : > { %s3009_s1 = scalar_select %p2302_p0, 1, 0 }
  0x36   : > { %3008 = sst [smem:[#allocation28_spill]] %s3007_s30  ;;  %s49_s15 = sor.u32 %s48_s11, %s47_s18 }
  0x37   : > { %3010 = sst [smem:[#allocation29_spill]] %s3009_s1  ;;  %p76_p2 = scmp.eq.s32.totalorder %s47_s18, 0 }
  0x38   : > { %p50_p4 = scmp.eq.s32.totalorder %s49_s15, 0  ;;  %s2307_s2 = sand.u32 1, %s2102_s23  }
  0x39   : > { %s3011_s16 = sadd.s32 1, %s2090_s20  ;;  %s3014_s8 = sld [smem:[#allocation25_spill]] }
  0x3a   : > { %s2312_s21 = scalar_select %p76_p2, %s2090_s20, %s3011_s16  }
  0x3b   : > { %s2315_s4 = scalar_select %p50_p4, %s2102_s23, %s52_s9  }
  0x3c   : > { %3012 = sst [smem:[#allocation30_spill]] %s2312_s21  ;;  %s1576_s30 = sshll.u32 %s2307_s2, 7 }
  0x3d   : > { %3013 = sst [smem:[#allocation31_spill]] %s2315_s4  ;;  %s1577_s1 = sshll.u32 %s2114_s26, 4 }
  0x3e   : > { %s1578_s18 = sshll.u32 %s2118_s27, 5  ;;  %s229_s11 = scalar_lea.vmem [#allocation2], %s1576_s30 }
  0x3f   : > { %s239_s15 = sshll.u32 %s229_s11, 4  ;;  %s234_s5 = sadd.s32 %s1578_s18, %s1577_s1  ;;  %s240_s15 = int_to_ptr.vmem [resolvable:$true] %s239_s15 }
  0x40   : > { %s1579_s25 = sshll.u32 %s234_s5, 3  ;;  %p3015_p1 = scmp.lt.s32.totalorder %s2122_s28, 4 }
  0x41   : > { %s3017_s0 = sld [smem:[#allocation32_spill]]  ;;  %s1586_s20 = sshll.u32 %s2307_s2, 6 }
  0x42   : > { %p2324_p12 = pnand %p3015_p1, %p2281_p13  ;;  %s226_s30 = scalar_lea.sflag [#allocation3], %s2307_s2 }
  0x43   : > { %s3018_s1 = smov 8   ;;  %s3019_s18 = smov 128  }
  0x44   : > { %s3020_s5 = int_to_ptr.vmem [resolvable:$true] %s3014_s8  ;;  %s1611_s4 = sshll.u32 %s2114_s26, 3 }
  0x45   : > { %1634 = dma.hbm_to_vmem [thread:$0]  (!%p2242_p7), %s2257_s12, 4096, %s3020_s5, %s2249_s14, %s3019_s18, %s3019_s18, %s3018_s1  }
  0x46   : > { %s1589_s10 = sshll.u32 %s2118_s27, 4  ;;  %s2126_s17 = smov 256  }
  0x47   : > { %s236_s23 = scalar_lea.hbm %s3017_s0, %s1579_s25  ;;  %s297_s25 = scalar_lea.vmem [#allocation8], %s1586_s20 }
  0x48   : > { %s237_s21 = sshll.u32 %s236_s23, 4  ;;  %s308_s23 = sshll.u32 %s297_s25, 4  ;;  %s238_s21 = int_to_ptr.hbm [resolvable:$true] %s237_s21  ;;  %s309_s23 = int_to_ptr.vmem [resolvable:$true] %s308_s23 }
  0x49   : > { %1628 = dma.hbm_to_vmem [thread:$0]  (!%p2324_p12), %s238_s21, 2048, %s240_s15, %s226_s30, %s3019_s18, %s3019_s18, %s3018_s1  }
  0x4a   : > { %s303_s11 = sadd.s32 %s1611_s4, %s1589_s10  ;;  %s294_s21 = scalar_lea.sflag [#allocation9], %s2307_s2 }
  0x4b   : > { %s1590_s9 = sshll.u32 %s303_s11, 3  ;;  %s2127_s15 = smov 16  }
  0x4c   : > { %s305_s24 = scalar_lea.hbm %s2960_s3, %s1590_s9  ;;  %320 = sbr.rel (%p2264_p10) target bundleno = 682 (0x2aa), region = 36 }
  0x4d   : > { %s306_s6 = sshll.u32 %s305_s24, 4  ;;  %s2358_s20 = sand.u32 (!%p2264_p10), 1, %s2098_s22   ;;  %s307_s6 = int_to_ptr.hbm [resolvable:$true] %s306_s6 }
  0x4e   : > { %1637 = dma.hbm_to_vmem [thread:$0]  (!%p2324_p12), %s307_s6, 1024, %s309_s23, %s294_s21, %s2126_s17, %s2126_s17, %s2127_s15  }
  0x4f   : > { %s1592_s12 = sshll.u32 (!%p2264_p10), %s2358_s20, 7  ;;  %s323_s0 = scalar_lea.sflag (!%p2264_p10), [#allocation3], %s2358_s20 }
  0x50   : > { %s2364_s24 = scalar_lea.vmem (!%p2264_p10), [#allocation2], %s1592_s12 }
  0x51   : > { %2061 = dma.done.wait (%p2292_p9), %s323_s0, 2048  }
  0x52   : > { %2063 = vsyncadd (%p2292_p9), %s323_s0, 4294965248  ;;  %s332_s28 = sand.u32 1, %s2217_s29   ;;  %s334_s6 = sand.u32 1, %s2086_s19  }
  0x53   : > { %s1593_s14 = sshll.u32 %s334_s6, 8  ;;  %s333_s7 = scalar_lea.sflag [#allocation6], %s332_s28 }
  0x54   : > { %s2372_s8 = scalar_lea.vmem [#allocation5], %s1593_s14 }
  0x55   : > { %2065 = dma.done.wait (%p2230_p6), %s333_s7, 8192  }
  0x56   : > { %2067 = vsyncadd (%p2230_p6), %s333_s7, 4294959104  ;;  %s1595_s16 = sshll.u32 %s2358_s20, 6  ;;  %s2379_s30 = scalar_lea.vmem [#allocation7], %s1593_s14 }
  0x57   : > { %s353_s1 = scalar_lea.sflag [#allocation9], %s2358_s20  ;;  %s2382_s18 = scalar_lea.vmem [#allocation8], %s1595_s16 }
  0x58   : > { %2069 = dma.done.wait (%p2292_p9), %s353_s1, 1024  }
  0x59   : > { %2071 = vsyncadd (%p2292_p9), %s353_s1, 4294966272  ;;  %v457_v0 = vld [vmem:[%s2372_s8 + $0x78] sm:$0xff]  ;;  %v456_v2 = vld [vmem:[%s2372_s8 + $0x70] sm:$0xff]  ;;  %v2128_v61 = vmov 0   ;;  %s1597_s29 = sshll.u32 %s2358_s20, 8  ;;  %s2801_s5 = scalar_lea.vmem [#allocation10], %s1592_s12 }
  0x5a   : > { %v473_v1 = vld [vmem:[%s2372_s8 + $0xf8] sm:$0xff]  ;;  %506 = vmatpush.xpose.msra.mxu0 %v457_v0  ;;  %v472_v3 = vld [vmem:[%s2372_s8 + $0xf0] sm:$0xff]  ;;  %v455_v4 = vld [vmem:[%s2372_s8 + $0x68] sm:$0xff]  ;;  %s2795_s13 = scalar_lea.vmem [#allocation11], %s1597_s29  ;;  %s3022_s4 = sld [smem:[#allocation21_spill]] }
  0x5b   : > { %571 = vmatpush.xpose.msra.mxu1 %v473_v1  ;;  %v471_v5 = vld [vmem:[%s2372_s8 + $0xe8] sm:$0xff]  ;;  %v454_v6 = vld [vmem:[%s2372_s8 + $0x60] sm:$0xff]  ;;  %v453_v8 = vld [vmem:[%s2372_s8 + $0x58] sm:$0xff]  ;;  %s3023_s10 = sld [smem:[#allocation22_spill]]  ;;  %s1374_s16 = sshll.u32 %s2795_s13, 4  ;;  %s1375_s16 = int_to_ptr.vmem [resolvable:$true] %s1374_s16 }
  0x5c   : > { %v470_v7 = vld [vmem:[%s2372_s8 + $0xe0] sm:$0xff]  ;;  %v469_v9 = vld [vmem:[%s2372_s8 + $0xd8] sm:$0xff]  ;;  %v452_v10 = vld [vmem:[%s2372_s8 + $0x50] sm:$0xff]  ;;  %s3024_s2 = sld [smem:[#allocation36_spill]] }
  0x5d   : > { %v468_v11 = vld [vmem:[%s2372_s8 + $0xd0] sm:$0xff]  ;;  %v451_v12 = vld [vmem:[%s2372_s8 + $0x48] sm:$0xff]  ;;  %v450_v14 = vld [vmem:[%s2372_s8 + $0x40] sm:$0xff]  ;;  %s3025_s7 = sld [smem:[#allocation35_spill]] }
  0x5e   : > { %507 = vmatpush.xpose.msra.mxu0 %v456_v2  ;;  %v467_v13 = vld [vmem:[%s2372_s8 + $0xc8] sm:$0xff]  ;;  %v466_v15 = vld [vmem:[%s2372_s8 + $0xc0] sm:$0xff]  ;;  %v449_v16 = vld [vmem:[%s2372_s8 + $0x38] sm:$0xff] }
  0x5f   : > { %572 = vmatpush.xpose.msra.mxu1 %v472_v3  ;;  %v465_v17 = vld [vmem:[%s2372_s8 + $0xb8] sm:$0xff]  ;;  %v448_v18 = vld [vmem:[%s2372_s8 + $0x30] sm:$0xff]  ;;  %v447_v20 = vld [vmem:[%s2372_s8 + $0x28] sm:$0xff] }
  0x60   : > { %v464_v19 = vld [vmem:[%s2372_s8 + $0xb0] sm:$0xff]  ;;  %v463_v21 = vld [vmem:[%s2372_s8 + $0xa8] sm:$0xff]  ;;  %v446_v22 = vld [vmem:[%s2372_s8 + $0x20] sm:$0xff]  ;;  %s1612_s25 = sshll.u32 %s3022_s4, 5  ;;  %s1600_s11 = sshll.u32 %s3022_s4, 4 }
  0x61   : > { %v462_v23 = vld [vmem:[%s2372_s8 + $0xa0] sm:$0xff]  ;;  %v445_v24 = vld [vmem:[%s2372_s8 + $0x18] sm:$0xff]  ;;  %v444_v26 = vld [vmem:[%s2372_s8 + $0x10] sm:$0xff]  ;;  %s1605_s23 = sshll.u32 %s3023_s10, 6  ;;  %s1601_s9 = sshll.u32 %s3023_s10, 5 }
  0x62   : > { %508 = vmatpush.xpose.msra.mxu0 %v455_v4  ;;  %v461_v25 = vld [vmem:[%s2372_s8 + $0x98] sm:$0xff]  ;;  %v460_v27 = vld [vmem:[%s2372_s8 + $0x90] sm:$0xff]  ;;  %v443_v28 = vld [vmem:[%s2372_s8 + $0x8] sm:$0xff]  ;;  %s1371_s21 = sadd.s32 %s1612_s25, %s1605_s23  ;;  %s1351_s17 = sadd.s32 %s1601_s9, %s1600_s11 }
  0x63   : > { %573 = vmatpush.xpose.msra.mxu1 %v471_v5  ;;  %v459_v29 = vld [vmem:[%s2372_s8 + $0x88] sm:$0xff]  ;;  %v410_v30 = vld [vmem:[%s2364_s24] sm:$0xff]  ;;  %v412_v36 = vld [vmem:[%s2364_s24 + $0x10] sm:$0xff]  ;;  %s1606_s15 = sshll.u32 %s1371_s21, 3  ;;  %s1602_s12 = sshll.u32 %s1351_s17, 3 }
  0x64   : > { %v442_v31 = vld [vmem:[%s2372_s8] sm:$0xff]  ;;  %v426_v33 = vmul.f32 0.088388346, %v410_v30  ;;  %v411_v34 = vld [vmem:[%s2364_s24 + $0x8] sm:$0xff]  ;;  %v428_v37 = vmul.f32 0.088388346, %v412_v36  ;;  %s1373_s28 = scalar_lea.hbm %s3024_s2, %s1606_s15 }
  0x65   : > { %v458_v32 = vld [vmem:[%s2372_s8 + $0x80] sm:$0xff]  ;;  %v427_v35 = vmul.f32 0.088388346, %v411_v34  ;;  %v413_v38 = vld [vmem:[%s2364_s24 + $0x18] sm:$0xff]  ;;  %v415_v42 = vld [vmem:[%s2364_s24 + $0x28] sm:$0xff]  ;;  %s1353_s8 = scalar_lea.hbm %s3025_s7, %s1602_s12  ;;  %s1376_s1 = sshll.u32 %s1373_s28, 4  ;;  %s1377_s1 = int_to_ptr.hbm [resolvable:$true] %s1376_s1 }
  0x66   : > { %509 = vmatpush.xpose.msra.mxu0 %v454_v6  ;;  %v429_v39 = vmul.f32 0.088388346, %v413_v38  ;;  %v414_v40 = vld [vmem:[%s2364_s24 + $0x20] sm:$0xff]  ;;  %v431_v43 = vmul.f32 0.088388346, %v415_v42  ;;  %v416_v44 = vld [vmem:[%s2364_s24 + $0x30] sm:$0xff] }
  0x67   : > { %574 = vmatpush.xpose.msra.mxu1 %v470_v7  ;;  %v430_v41 = vmul.f32 0.088388346, %v414_v40  ;;  %v432_v45 = vmul.f32 0.088388346, %v416_v44  ;;  %v417_v46 = vld [vmem:[%s2364_s24 + $0x38] sm:$0xff]  ;;  %v418_v48 = vld [vmem:[%s2364_s24 + $0x40] sm:$0xff] }
  0x68   : > { %v433_v47 = vmul.f32 0.088388346, %v417_v46  ;;  %v434_v49 = vmul.f32 0.088388346, %v418_v48  ;;  %v419_v50 = vld [vmem:[%s2364_s24 + $0x48] sm:$0xff]  ;;  %v420_v52 = vld [vmem:[%s2364_s24 + $0x50] sm:$0xff] }
  0x69   : > { %v435_v51 = vmul.f32 0.088388346, %v419_v50  ;;  %v436_v53 = vmul.f32 0.088388346, %v420_v52  ;;  %v421_v54 = vld [vmem:[%s2364_s24 + $0x58] sm:$0xff]  ;;  %v422_v56 = vld [vmem:[%s2364_s24 + $0x60] sm:$0xff] }
  0x6a   : > { %510 = vmatpush.xpose.msra.mxu0 %v453_v8  ;;  %v437_v55 = vmul.f32 0.088388346, %v421_v54  ;;  %v438_v57 = vmul.f32 0.088388346, %v422_v56  ;;  %v636_v58 = vld [vmem:[%s2382_s18] sm:$0xff]  ;;  %v637_v59 = vld [vmem:[%s2382_s18 + $0x8] sm:$0xff] }
  0x6b   : > { %575 = vmatpush.xpose.msra.mxu1 %v469_v9  ;;  %vm644_vm0 = vnez %v636_v58  ;;  %vm645_vm1 = vnez %v637_v59  ;;  %v423_v60 = vld [vmem:[%s2364_s24 + $0x68] sm:$0xff]  ;;  %v424_v3 = vld [vmem:[%s2364_s24 + $0x70] sm:$0xff]  ;;  %s1340_s4 = scalar_lea.sflag [#allocation12], %s2358_s20  ;;  %s1974_s10 = sshra.s32 %s1377_s1, 4  ;;  %s1975_s10 = int_to_ptr.hbm [resolvable:$true] %s1974_s10 }
  0x6c   : > { %v652_v62 = vsel %vm644_vm0, 16843009, %v2128_v61  ;;  %v653_v63 = vsel %vm645_vm1, 16843009, %v2128_v61  ;;  %v439_v0 = vmul.f32 0.088388346, %v423_v60  ;;  %p1981_p10 = scmp.lt.s32.totalorder %s1975_s10, %s3024_s2 }
  0x6d   : > { %v660_v1 = vunpack.c.0.s8 %v652_v62  ;;  %v661_v2 = vunpack.c.0.s8 %v653_v63  ;;  %v440_v5 = vmul.f32 0.088388346, %v424_v3  ;;  %v662_v6 = vunpack.c.1.s8 %v652_v62  ;;  %s1976_s25 = scalar_lea.hbm %s1975_s10, 256  ;;  %s1980_s9 = scalar_lea.hbm %s3024_s2, 1024 }
  0x6e   : > { %511 = vmatpush.xpose.msra.mxu0 %v452_v10  ;;  %v663_v7 = vunpack.c.1.s8 %v653_v63  ;;  %v425_v10 = vld [vmem:[%s2364_s24 + $0x78] sm:$0xff]  ;;  %p1977_p4 = scmp.ne.s32.totalorder %s1975_s10, %s1976_s25  ;;  %p1982_p13 = scmp.lt.s32.totalorder %s1980_s9, %s1976_s25 }
  0x6f   : > { %576 = vmatpush.xpose.msra.mxu1 %v468_v11  ;;  %v692_v4 = vpack.c.b16 %v661_v2, %v660_v1  ;;  %v441_v11 = vmul.f32 0.088388346, %v425_v10  ;;  %v641_v10 = vld [vmem:[%s2382_s18 + $0x28] sm:$0xff] }
  0x70   : > { %v694_v9 = vpack.c.b16 %v663_v7, %v662_v6  ;;  %p1978_p6 = pnand %p1977_p4, %p2296_p11  ;;  %p1983_p3 = por %p1982_p13, %p1981_p10 }
  0x71   : > { %v693_v8 = vpack.c.b8 %v692_v4, %v692_v4 }
  0x72   : > { %512 = vmatpush.xpose.msra.mxu0 %v451_v12  ;;  %p1979_p7 = pneg %p1978_p6 }
  0x73   : > { %577 = vmatpush.xpose.msra.mxu1 %v467_v13  ;;  %vm724_vm2 = vnez %v693_v8  ;;  %v695_v13 = vpack.c.b8 %v694_v9, %v694_v9  ;;  %v640_v9 = vld [vmem:[%s2382_s18 + $0x20] sm:$0xff] }
  0x74   : > { %v740_v12 = vsel %vm724_vm2, 16843009, %v2128_v61  ;;  %p1984_p5 = pnand %p1983_p3, %p1979_p7 }
  0x75   : > { %vm725_vm3 = vnez %v695_v13 }
  0x76   : > { %513 = vmatpush.xpose.msra.mxu0 %v450_v14  ;;  %v664_v14 = vunpack.c.2.s8 %v652_v62 }
  0x77   : > { %578 = vmatpush.xpose.msra.mxu1 %v466_v15  ;;  %v665_v15 = vunpack.c.2.s8 %v653_v63 }
  0x7a   : > { %514 = vmatpush.xpose.msra.mxu0 %v449_v16  ;;  %v756_v16 = vunpack.c.0.s8 %v740_v12 }
  0x7b   : > { %579 = vmatpush.xpose.msra.mxu1 %v465_v17  ;;  %v757_v17 = vunpack.c.1.s8 %v740_v12 }
  0x7c   : > { %vm788_vm4 = vcmp.ne.s32.totalorder %v756_v16, 0 }
  0x7d   : > { %vm789_vm5 = vcmp.ne.s32.totalorder %v757_v17, 0 }
  0x7e   : > { %515 = vmatpush.xpose.msra.mxu0 %v448_v18  ;;  %v696_v18 = vpack.c.b16 %v665_v15, %v664_v14 }
  0x7f   : > { %580 = vmatpush.xpose.msra.mxu1 %v464_v19  ;;  %v741_v19 = vsel %vm725_vm3, 16843009, %v2128_v61 }
  0x82   : > { %516 = vmatpush.xpose.msra.mxu0 %v447_v20  ;;  %v638_v20 = vld [vmem:[%s2382_s18 + $0x10] sm:$0xff] }
  0x83   : > { %581 = vmatpush.xpose.msra.mxu1 %v463_v21  ;;  %v639_v21 = vld [vmem:[%s2382_s18 + $0x18] sm:$0xff]  ;;  %vm646_vm6 = vnez %v638_v20 }
  0x84   : > { %vm647_vm7 = vnez %v639_v21 }
  0x85   : > { %v2454_v34 = vsel %vm647_vm7, 16843009, %v2128_v61 }
  0x86   : > { %517 = vmatpush.xpose.msra.mxu0 %v446_v22  ;;  %v669_v40 = vunpack.c.0.s8 %v2454_v34  ;;  %v673_v1 = vunpack.c.2.s8 %v2454_v34  ;;  %v675_v15 = vunpack.c.3.s8 %v2454_v34 }
  0x87   : > { %582 = vmatpush.xpose.msra.mxu1 %v462_v23 }
  0x8a   : > { %518 = vmatpush.xpose.msra.mxu0 %v445_v24  ;;  %v697_v24 = vpack.c.b8 %v696_v18, %v696_v18 }
  0x8b   : > { %583 = vmatpush.xpose.msra.mxu1 %v461_v25  ;;  %v666_v25 = vunpack.c.3.s8 %v652_v62 }
  0x8c   : > { %vm726_vm8 = vnez %v697_v24 }
  0x8e   : > { %519 = vmatpush.xpose.msra.mxu0 %v444_v26  ;;  %v667_v26 = vunpack.c.3.s8 %v653_v63 }
  0x8f   : > { %584 = vmatpush.xpose.msra.mxu1 %v460_v27 }
  0x92   : > { %520 = vmatpush.xpose.msra.mxu0 %v443_v28 }
  0x93   : > { %585 = vmatpush.xpose.msra.mxu1 %v459_v29  ;;  %v758_v29 = vunpack.c.0.s8 %v741_v19 }
  0x95   : > { %vm790_vm9 = vcmp.ne.s32.totalorder %v758_v29, 0 }
  0x96   : > { %521 = vmatpush.xpose.msra.mxu0 %v442_v31  ;;  %v759_v31 = vunpack.c.1.s8 %v741_v19 }
  0x97   : > { %586 = vmatpush.xpose.msra.mxu1 %v458_v32  ;;  %v698_v32 = vpack.c.b16 %v667_v26, %v666_v25 }
  0x98   : > { %vm791_vm10 = vcmp.ne.s32.totalorder %v759_v31, 0 }
  0x99   : > { %522 = vmatmul.f32.vlgmr.msra.gmra.mxu0 %v426_v33  ;;  %v699_v38 = vpack.c.b8 %v698_v32, %v698_v32 }
  0x9a   : > { %587 = vmatmul.f32.vlgmr.msra.gmra.mxu1 %v426_v33  ;;  %v2451_v33 = vsel %vm646_vm6, 16843009, %v2128_v61 }
  0x9b   : > { %vm727_vm11 = vnez %v699_v38  ;;  %v670_v48 = vunpack.c.1.s8 %v2451_v33  ;;  %v674_v14 = vunpack.c.3.s8 %v2451_v33 }
  0x9d   : > { %v706_v21 = vpack.c.b16 %v675_v15, %v674_v14 }
  0x9f   : > { %v707_v29 = vpack.c.b8 %v706_v21, %v706_v21 }
  0xa1   : > { %525 = vmatmul.f32.gmra.mxu0 %v427_v35 }
  0xa2   : > { %590 = vmatmul.f32.gmra.mxu1 %v427_v35  ;;  %v742_v35 = vsel %vm726_vm8, 16843009, %v2128_v61 }
  0xa3   : > { %v760_v44 = vunpack.c.0.s8 %v742_v35 }
  0xa5   : > { %vm792_vm12 = vcmp.ne.s32.totalorder %v760_v44, 0 }
  0xa9   : > { %528 = vmatmul.f32.gmra.mxu0 %v428_v37 }
  0xaa   : > { %593 = vmatmul.f32.gmra.mxu1 %v428_v37 }
  0xb1   : > { %531 = vmatmul.f32.gmra.mxu0 %v429_v39 }
  0xb2   : > { %596 = vmatmul.f32.gmra.mxu1 %v429_v39  ;;  %v668_v39 = vunpack.c.0.s8 %v2451_v33 }
  0xb4   : > { %v700_v46 = vpack.c.b16 %v669_v40, %v668_v39 }
  0xb6   : > { %v701_v52 = vpack.c.b8 %v700_v46, %v700_v46 }
  0xb8   : > { %vm728_vm14 = vnez %v701_v52 }
  0xb9   : > { %534 = vmatmul.f32.gmra.mxu0 %v430_v41  ;;  %v744_v59 = vsel %vm728_vm14, 16843009, %v2128_v61 }
  0xba   : > { %599 = vmatmul.f32.gmra.mxu1 %v430_v41  ;;  %v765_v6 = vunpack.c.1.s8 %v744_v59 }
  0xbc   : > { %vm797_vm3 = vcmp.ne.s32.totalorder %v765_v6, 0  ;;  %v642_v6 = vld [vmem:[%s2382_s18 + $0x30] sm:$0xff] }
  0xc1   : > { %537 = vmatmul.f32.gmra.mxu0 %v431_v43 }
  0xc2   : > { %602 = vmatmul.f32.gmra.mxu1 %v431_v43 }
  0xc9   : > { %540 = vmatmul.f32.gmra.mxu0 %v432_v45 }
  0xca   : > { %605 = vmatmul.f32.gmra.mxu1 %v432_v45  ;;  %v761_v45 = vunpack.c.1.s8 %v742_v35 }
  0xcc   : > { %vm793_vm13 = vcmp.ne.s32.totalorder %v761_v45, 0 }
  0xd1   : > { %543 = vmatmul.f32.gmra.mxu0 %v433_v47 }
  0xd2   : > { %608 = vmatmul.f32.gmra.mxu1 %v433_v47  ;;  %v743_v47 = vsel %vm727_vm11, 16843009, %v2128_v61 }
  0xd3   : > { %v762_v56 = vunpack.c.0.s8 %v743_v47 }
  0xd5   : > { %vm794_vm15 = vcmp.ne.s32.totalorder %v762_v56, 0 }
  0xd9   : > { %546 = vmatmul.f32.gmra.mxu0 %v434_v49 }
  0xda   : > { %611 = vmatmul.f32.gmra.mxu1 %v434_v49  ;;  %v671_v49 = vunpack.c.1.s8 %v2454_v34 }
  0xdc   : > { %v702_v58 = vpack.c.b16 %v671_v49, %v670_v48 }
  0xde   : > { %v703_v60 = vpack.c.b8 %v702_v58, %v702_v58 }
  0xe0   : > { %vm729_vm1 = vnez %v703_v60 }
  0xe1   : > { %549 = vmatmul.f32.gmra.mxu0 %v435_v51  ;;  %v745_v8 = vsel %vm729_vm1, 16843009, %v2128_v61 }
  0xe2   : > { %614 = vmatmul.f32.gmra.mxu1 %v435_v51  ;;  %v766_v18 = vunpack.c.0.s8 %v745_v8  ;;  %v767_v20 = vunpack.c.1.s8 %v745_v8 }
  0xe4   : > { %vm798_vm7 = vcmp.ne.s32.totalorder %v766_v18, 0  ;;  %vm799_vm8 = vcmp.ne.s32.totalorder %v767_v20, 0  ;;  %v489_v18 = vld [vmem:[%s2379_s30 + $0x78] sm:$0xff] }
  0xe5   : > { %996 = vmatpush.msra.mxu2 %v489_v18  ;;  %v497_v18 = vld [vmem:[%s2379_s30 + $0xb8] sm:$0xff] }
  0xe9   : > { %552 = vmatmul.f32.gmra.mxu0 %v436_v53 }
  0xea   : > { %617 = vmatmul.f32.gmra.mxu1 %v436_v53 }
  0xf1   : > { %555 = vmatmul.f32.gmra.mxu0 %v437_v55 }
  0xf2   : > { %620 = vmatmul.f32.gmra.mxu1 %v437_v55 }
  0xf9   : > { %558 = vmatmul.f32.gmra.mxu0 %v438_v57 }
  0xfa   : > { %623 = vmatmul.f32.gmra.mxu1 %v438_v57  ;;  %v763_v57 = vunpack.c.1.s8 %v743_v47 }
  0xfc   : > { %vm795_vm0 = vcmp.ne.s32.totalorder %v763_v57, 0 }
 0x101   : > { %561 = vmatmul.f32.gmra.mxu0 %v439_v0 }
 0x102   : > { %626 = vmatmul.f32.gmra.mxu1 %v439_v0  ;;  %v672_v0 = vunpack.c.2.s8 %v2451_v33 }
 0x104   : > { %v704_v7 = vpack.c.b16 %v673_v1, %v672_v0 }
 0x106   : > { %v705_v13 = vpack.c.b8 %v704_v7, %v704_v7  ;;  %v643_v7 = vld [vmem:[%s2382_s18 + $0x38] sm:$0xff]  ;;  %s1356_s18 = sshll.u32 %s1353_s8, 4  ;;  %s2891_s18 = int_to_ptr.hbm [resolvable:$true] %s1356_s18 }
 0x108   : > { %vm730_vm6 = vnez %v705_v13 }
 0x109   : > { %564 = vmatmul.f32.gmra.mxu0 %v440_v5  ;;  %v746_v24 = vsel %vm730_vm6, 16843009, %v2128_v61 }
 0x10a   : > { %629 = vmatmul.f32.gmra.mxu1 %v440_v5  ;;  %v764_v5 = vunpack.c.0.s8 %v744_v59  ;;  %v768_v35 = vunpack.c.0.s8 %v746_v24 }
 0x10c   : > { %vm796_vm2 = vcmp.ne.s32.totalorder %v764_v5, 0 }
 0x111   : > { %567 = vmatmul.f32.gmra.mxu0 %v441_v11 }
 0x112   : > { %632 = vmatmul.f32.gmra.mxu1 %v441_v11 }
 0x116   : > { %v523_v22 = vpop.f32.mrf.mxu0 }
 0x117   : > { %v588_v23 = vpop.f32.mrf.mxu1  ;;  %v2444_v27 = vsel %vm788_vm4, -1e+18, %v523_v22  ;;  %vm648_vm4 = vnez %v640_v9 }
 0x118   : > { %v2446_v28 = vsel %vm789_vm5, -1e+18, %v588_v23  ;;  %vm649_vm5 = vnez %v641_v10  ;;  %v2495_v22 = vsel %vm648_vm4, 16843009, %v2128_v61 }
 0x119   : > { %v852_v30 = vmax.f32 %v2444_v27, %v2446_v28  ;;  %v2498_v23 = vsel %vm649_vm5, 16843009, %v2128_v61  ;;  %v678_v39 = vunpack.c.1.s8 %v2495_v22  ;;  %v680_v58 = vunpack.c.2.s8 %v2495_v22 }
 0x11a   : > { %v677_v31 = vunpack.c.0.s8 %v2498_v23  ;;  %v679_v40 = vunpack.c.1.s8 %v2498_v23  ;;  %v681_v59 = vunpack.c.2.s8 %v2498_v23 }
 0x11b   : > { %853 = vmax.xlane.f32.xlu0 %v852_v30  ;;  %v676_v30 = vunpack.c.0.s8 %v2495_v22 }
 0x11e   : > { %v526_v36 = vpop.f32.mrf.mxu0 }
 0x11f   : > { %v591_v37 = vpop.f32.mrf.mxu1  ;;  %v2459_v41 = vsel %vm790_vm9, -1e+18, %v526_v36  ;;  %v769_v36 = vunpack.c.1.s8 %v746_v24  ;;  %vm731_vm9 = vnez %v707_v29  ;;  %v504_v24 = vld [vmem:[%s2379_s30 + $0xf0] sm:$0xff] }
 0x120   : > { %v2461_v42 = vsel %vm791_vm10, -1e+18, %v591_v37  ;;  %v708_v37 = vpack.c.b16 %v677_v31, %v676_v30  ;;  %vm800_vm10 = vcmp.ne.s32.totalorder %v768_v35, 0  ;;  %v747_v38 = vsel %vm731_vm9, 16843009, %v2128_v61  ;;  %v487_v30 = vld [vmem:[%s2379_s30 + $0x68] sm:$0xff] }
 0x121   : > { %v855_v43 = vmax.f32 %v2459_v41, %v2461_v42  ;;  %vm801_vm11 = vcmp.ne.s32.totalorder %v769_v36, 0  ;;  %v770_v49 = vunpack.c.0.s8 %v747_v38  ;;  %v503_v31 = vld [vmem:[%s2379_s30 + $0xe8] sm:$0xff] }
 0x122   : > { %v709_v45 = vpack.c.b8 %v708_v37, %v708_v37 }
 0x123   : > { %856 = vmax.xlane.f32.xlu0 %v855_v43 }
 0x126   : > { %v529_v50 = vpop.f32.mrf.mxu0 }
 0x127   : > { %v594_v51 = vpop.f32.mrf.mxu1  ;;  %v2468_v53 = vsel %vm792_vm12, -1e+18, %v529_v50  ;;  %v771_v50 = vunpack.c.1.s8 %v747_v38  ;;  %vm732_vm12 = vnez %v709_v45 }
 0x128   : > { %v2470_v54 = vsel %vm793_vm13, -1e+18, %v594_v51  ;;  %v710_v51 = vpack.c.b16 %v679_v40, %v678_v39  ;;  %vm802_vm13 = vcmp.ne.s32.totalorder %v770_v49, 0  ;;  %v748_v52 = vsel %vm732_vm12, 16843009, %v2128_v61 }
 0x129   : > { %v858_v55 = vmax.f32 %v2468_v53, %v2470_v54  ;;  %vm803_vm14 = vcmp.ne.s32.totalorder %v771_v50, 0  ;;  %v772_v0 = vunpack.c.0.s8 %v748_v52  ;;  %v773_v1 = vunpack.c.1.s8 %v748_v52  ;;  %v485_v50 = vld [vmem:[%s2379_s30 + $0x58] sm:$0xff] }
 0x12b   : > { %859 = vmax.xlane.f32.xlu1 %v858_v55  ;;  %v711_v55 = vpack.c.b8 %v710_v51, %v710_v51  ;;  %vm805_vm1 = vcmp.ne.s32.totalorder %v773_v1, 0  ;;  %v501_v51 = vld [vmem:[%s2379_s30 + $0xd8] sm:$0xff] }
 0x12e   : > { %v532_v62 = vpop.f32.mrf.mxu0 }
 0x12f   : > { %v597_v63 = vpop.f32.mrf.mxu1  ;;  %v2477_v2 = vsel %vm794_vm15, -1e+18, %v532_v62  ;;  %vm733_vm15 = vnez %v711_v55  ;;  %v484_v55 = vld [vmem:[%s2379_s30 + $0x50] sm:$0xff] }
 0x130   : > { %v2479_v3 = vsel %vm795_vm0, -1e+18, %v597_v63  ;;  %vm804_vm0 = vcmp.ne.s32.totalorder %v772_v0, 0  ;;  %v749_v5 = vsel %vm733_vm15, 16843009, %v2128_v61 }
 0x131   : > { %v861_v4 = vmax.f32 %v2477_v2, %v2479_v3  ;;  %v774_v15 = vunpack.c.0.s8 %v749_v5  ;;  %v775_v21 = vunpack.c.1.s8 %v749_v5 }
 0x133   : > { %862 = vmax.xlane.f32.xlu1 %v861_v4  ;;  %v712_v4 = vpack.c.b16 %v681_v59, %v680_v58  ;;  %vm806_vm5 = vcmp.ne.s32.totalorder %v774_v15, 0  ;;  %vm807_vm6 = vcmp.ne.s32.totalorder %v775_v21, 0  ;;  %v483_v58 = vld [vmem:[%s2379_s30 + $0x48] sm:$0xff]  ;;  %v481_v15 = vld [vmem:[%s2379_s30 + $0x38] sm:$0xff]  ;;  %v496_v21 = vld [vmem:[%s2379_s30 + $0xb0] sm:$0xff] }
 0x134   : > { %v499_v59 = vld [vmem:[%s2379_s30 + $0xc8] sm:$0xff] }
 0x135   : > { %v713_v10 = vpack.c.b8 %v712_v4, %v712_v4 }
 0x136   : > { %v535_v11 = vpop.f32.mrf.mxu0 }
 0x137   : > { %v600_v12 = vpop.f32.mrf.mxu1  ;;  %v2488_v16 = vsel %vm796_vm2, -1e+18, %v535_v11  ;;  %v682_v11 = vunpack.c.3.s8 %v2495_v22  ;;  %vm650_vm2 = vnez %v642_v6  ;;  %vm734_vm4 = vnez %v713_v10 }
 0x138   : > { %v2490_v17 = vsel %vm797_vm3, -1e+18, %v600_v12  ;;  %v683_v12 = vunpack.c.3.s8 %v2498_v23  ;;  %vm651_vm3 = vnez %v643_v7  ;;  %v488_v23 = vld [vmem:[%s2379_s30 + $0x70] sm:$0xff]  ;;  %v750_v29 = vsel %vm734_vm4, 16843009, %v2128_v61 }
 0x139   : > { %v864_v19 = vmax.f32 %v2488_v16, %v2490_v17  ;;  %997 = vmatpush.msra.mxu2 %v488_v23  ;;  %v777_v49 = vunpack.c.1.s8 %v750_v29 }
 0x13a   : > { %v714_v22 = vpack.c.b16 %v683_v12, %v682_v11 }
 0x13b   : > { %865 = vmax.xlane.f32.xlu2 %v864_v19  ;;  %v505_v19 = vld [vmem:[%s2379_s30 + $0xf8] sm:$0xff]  ;;  %998 = vmatpush.msra.mxu2 %v487_v30  ;;  %vm809_vm9 = vcmp.ne.s32.totalorder %v777_v49, 0 }
 0x13c   : > { %1061 = vmatpush.msra.mxu3 %v505_v19  ;;  %v715_v36 = vpack.c.b8 %v714_v22, %v714_v22 }
 0x13e   : > { %v538_v25 = vpop.f32.mrf.mxu0  ;;  %1062 = vmatpush.msra.mxu3 %v504_v24 }
 0x13f   : > { %v603_v26 = vpop.f32.mrf.mxu1  ;;  %v2503_v32 = vsel %vm798_vm7, -1e+18, %v538_v25  ;;  %v2543_v25 = vsel %vm650_vm2, 16843009, %v2128_v61  ;;  %vm735_vm7 = vnez %v715_v36 }
 0x140   : > { %v2505_v33 = vsel %vm799_vm8, -1e+18, %v603_v26  ;;  %v2546_v26 = vsel %vm651_vm3, 16843009, %v2128_v61  ;;  %v684_v37 = vunpack.c.0.s8 %v2543_v25  ;;  %1063 = vmatpush.msra.mxu3 %v503_v31  ;;  %v686_v4 = vunpack.c.1.s8 %v2543_v25 }
 0x141   : > { %v867_v34 = vmax.f32 %v2503_v32, %v2505_v33  ;;  %v685_v38 = vunpack.c.0.s8 %v2546_v26  ;;  %v687_v5 = vunpack.c.1.s8 %v2546_v26  ;;  %v688_v30 = vunpack.c.2.s8 %v2543_v25 }
 0x142   : > { %v689_v31 = vunpack.c.2.s8 %v2546_v26 }
 0x143   : > { %868 = vmax.xlane.f32.xlu2 %v867_v34  ;;  %v716_v52 = vpack.c.b16 %v685_v38, %v684_v37  ;;  %v718_v19 = vpack.c.b16 %v687_v5, %v686_v4  ;;  %v491_v4 = vld [vmem:[%s2379_s30 + $0x88] sm:$0xff] }
 0x144   : > { %v720_v49 = vpack.c.b16 %v689_v31, %v688_v30 }
 0x145   : > { %v717_v1 = vpack.c.b8 %v716_v52, %v716_v52  ;;  %v476_v52 = vld [vmem:[%s2379_s30 + $0x10] sm:$0xff] }
 0x146   : > { %v541_v43 = vpop.f32.mrf.mxu0 }
 0x147   : > { %v606_v44 = vpop.f32.mrf.mxu1  ;;  %v2512_v46 = vsel %vm800_vm10, -1e+18, %v541_v43  ;;  %v486_v43 = vld [vmem:[%s2379_s30 + $0x60] sm:$0xff]  ;;  %vm736_vm10 = vnez %v717_v1  ;;  %v475_v1 = vld [vmem:[%s2379_s30 + $0x8] sm:$0xff] }
 0x148   : > { %v2514_v47 = vsel %vm801_vm11, -1e+18, %v606_v44  ;;  %v502_v44 = vld [vmem:[%s2379_s30 + $0xe0] sm:$0xff]  ;;  %999 = vmatpush.msra.mxu2 %v486_v43  ;;  %v752_v22 = vsel %vm736_vm10, 16843009, %v2128_v61 }
 0x149   : > { %v870_v48 = vmax.f32 %v2512_v46, %v2514_v47  ;;  %1064 = vmatpush.msra.mxu3 %v502_v44  ;;  %v780_v43 = vunpack.c.0.s8 %v752_v22  ;;  %v781_v44 = vunpack.c.1.s8 %v752_v22 }
 0x14a   : > { %1000 = vmatpush.msra.mxu2 %v485_v50  ;;  %v477_v50 = vld [vmem:[%s2379_s30 + $0x18] sm:$0xff] }
 0x14b   : > { %871 = vmax.xlane.f32.xlu0 %v870_v48  ;;  %v776_v48 = vunpack.c.0.s8 %v750_v29  ;;  %1065 = vmatpush.msra.mxu3 %v501_v51  ;;  %v719_v29 = vpack.c.b8 %v718_v19, %v718_v19  ;;  %v493_v51 = vld [vmem:[%s2379_s30 + $0x98] sm:$0xff]  ;;  %vm813_vm15 = vcmp.ne.s32.totalorder %v781_v44, 0 }
 0x14c   : > { %1001 = vmatpush.msra.mxu2 %v484_v55  ;;  %v492_v55 = vld [vmem:[%s2379_s30 + $0x90] sm:$0xff] }
 0x14d   : > { %vm808_vm8 = vcmp.ne.s32.totalorder %v776_v48, 0  ;;  %v494_v48 = vld [vmem:[%s2379_s30 + $0xa0] sm:$0xff] }
 0x14e   : > { %v544_v56 = vpop.f32.mrf.mxu0  ;;  %1002 = vmatpush.msra.mxu2 %v483_v58 }
 0x14f   : > { %v609_v57 = vpop.f32.mrf.mxu1  ;;  %v2521_v60 = vsel %vm802_vm13, -1e+18, %v544_v56  ;;  %v500_v56 = vld [vmem:[%s2379_s30 + $0xd0] sm:$0xff]  ;;  %vm737_vm13 = vnez %v719_v29 }
 0x150   : > { %v2523_v62 = vsel %vm803_vm14, -1e+18, %v609_v57  ;;  %v751_v57 = vsel %vm735_vm7, 16843009, %v2128_v61  ;;  %1066 = vmatpush.msra.mxu3 %v500_v56  ;;  %vm812_vm14 = vcmp.ne.s32.totalorder %v780_v43, 0 }
 0x151   : > { %v873_v63 = vmax.f32 %v2521_v60, %v2523_v62  ;;  %v778_v11 = vunpack.c.0.s8 %v751_v57  ;;  %v779_v12 = vunpack.c.1.s8 %v751_v57  ;;  %v753_v56 = vsel %vm737_vm13, 16843009, %v2128_v61 }
 0x152   : > { %1067 = vmatpush.msra.mxu3 %v499_v59  ;;  %v721_v59 = vpack.c.b8 %v720_v49, %v720_v49 }
 0x153   : > { %874 = vmax.xlane.f32.xlu1 %v873_v63  ;;  %vm810_vm11 = vcmp.ne.s32.totalorder %v778_v11, 0  ;;  %vm811_vm12 = vcmp.ne.s32.totalorder %v779_v12, 0  ;;  %v783_v11 = vunpack.c.1.s8 %v753_v56  ;;  %v474_v12 = vld [vmem:[%s2379_s30] sm:$0xff] }
 0x155   : > { %vm815_vm2 = vcmp.ne.s32.totalorder %v783_v11, 0 }
 0x156   : > { %v547_v8 = vpop.f32.mrf.mxu0 }
 0x157   : > { %v612_v9 = vpop.f32.mrf.mxu1  ;;  %v2532_v13 = vsel %vm804_vm0, -1e+18, %v547_v8  ;;  %v482_v8 = vld [vmem:[%s2379_s30 + $0x40] sm:$0xff]  ;;  %vm738_vm0 = vnez %v721_v59 }
 0x158   : > { %v2534_v14 = vsel %vm805_vm1, -1e+18, %v612_v9  ;;  %v498_v9 = vld [vmem:[%s2379_s30 + $0xc0] sm:$0xff]  ;;  %1003 = vmatpush.msra.mxu2 %v482_v8 }
 0x159   : > { %v876_v20 = vmax.f32 %v2532_v13, %v2534_v14  ;;  %1068 = vmatpush.msra.mxu3 %v498_v9 }
 0x15a   : > { %1004 = vmatpush.msra.mxu2 %v481_v15  ;;  %v490_v15 = vld [vmem:[%s2379_s30 + $0x80] sm:$0xff] }
 0x15b   : > { %877 = vmax.xlane.f32.xlu2 %v876_v20  ;;  %v480_v20 = vld [vmem:[%s2379_s30 + $0x30] sm:$0xff]  ;;  %1069 = vmatpush.msra.mxu3 %v497_v18 }
 0x15c   : > { %1005 = vmatpush.msra.mxu2 %v480_v20 }
 0x15d   : > { %1070 = vmatpush.msra.mxu3 %v496_v21 }
 0x15e   : > { %v550_v34 = vpop.f32.mrf.mxu0 }
 0x15f   : > { %v615_v35 = vpop.f32.mrf.mxu1  ;;  %v2553_v39 = vsel %vm806_vm5, -1e+18, %v550_v34  ;;  %v479_v34 = vld [vmem:[%s2379_s30 + $0x28] sm:$0xff] }
 0x160   : > { %v2555_v40 = vsel %vm807_vm6, -1e+18, %v615_v35  ;;  %v495_v35 = vld [vmem:[%s2379_s30 + $0xa8] sm:$0xff]  ;;  %1006 = vmatpush.msra.mxu2 %v479_v34 }
 0x161   : > { %v879_v45 = vmax.f32 %v2553_v39, %v2555_v40  ;;  %1071 = vmatpush.msra.mxu3 %v495_v35 }
 0x163   : > { %880 = vmax.xlane.f32.xlu0 %v879_v45  ;;  %v478_v45 = vld [vmem:[%s2379_s30 + $0x20] sm:$0xff]  ;;  %1072 = vmatpush.msra.mxu3 %v494_v48  ;;  %s1354_s30 = sshll.u32 %s2801_s5, 4  ;;  %s2889_s30 = int_to_ptr.vmem [resolvable:$true] %s1354_s30 }
 0x164   : > { %1007 = vmatpush.msra.mxu2 %v478_v45 }
 0x165   : > { %1073 = vmatpush.msra.mxu3 %v493_v51 }
 0x166   : > { %v553_v63 = vpop.f32.mrf.mxu0  ;;  %1008 = vmatpush.msra.mxu2 %v477_v50 }
 0x167   : > { %v618_v0 = vpop.f32.mrf.mxu1  ;;  %v2570_v6 = vsel %vm808_vm8, -1e+18, %v553_v63  ;;  %1074 = vmatpush.msra.mxu3 %v492_v55  ;;  %v690_v63 = vunpack.c.3.s8 %v2543_v25 }
 0x168   : > { %v2572_v7 = vsel %vm809_vm9, -1e+18, %v618_v0  ;;  %1009 = vmatpush.msra.mxu2 %v476_v52  ;;  %v691_v0 = vunpack.c.3.s8 %v2546_v26  ;;  %v754_v26 = vsel %vm738_vm0, 16843009, %v2128_v61 }
 0x169   : > { %v882_v10 = vmax.f32 %v2570_v6, %v2572_v7  ;;  %1075 = vmatpush.msra.mxu3 %v491_v4  ;;  %v785_v29 = vunpack.c.1.s8 %v754_v26 }
 0x16a   : > { %1010 = vmatpush.msra.mxu2 %v475_v1  ;;  %v722_v25 = vpack.c.b16 %v691_v0, %v690_v63 }
 0x16b   : > { %883 = vmax.xlane.f32.xlu1 %v882_v10  ;;  %v782_v10 = vunpack.c.0.s8 %v753_v56  ;;  %1076 = vmatpush.msra.mxu3 %v490_v15  ;;  %vm817_vm5 = vcmp.ne.s32.totalorder %v785_v29, 0 }
 0x16c   : > { %1011 = vmatpush.msra.mxu2 %v474_v12  ;;  %v723_v20 = vpack.c.b8 %v722_v25, %v722_v25 }
 0x16d   : > { %vm814_vm1 = vcmp.ne.s32.totalorder %v782_v10, 0 }
 0x16e   : > { %v556_v23 = vpop.f32.mrf.mxu0  ;;  %vm739_vm3 = vnez %v723_v20 }
 0x16f   : > { %v621_v24 = vpop.f32.mrf.mxu1  ;;  %v2587_v36 = vsel %vm810_vm11, -1e+18, %v556_v23  ;;  %v755_v30 = vsel %vm739_vm3, 16843009, %v2128_v61 }
 0x170   : > { %v2589_v37 = vsel %vm811_vm12, -1e+18, %v621_v24  ;;  %v784_v24 = vunpack.c.0.s8 %v754_v26  ;;  %v786_v44 = vunpack.c.0.s8 %v755_v30  ;;  %v787_v45 = vunpack.c.1.s8 %v755_v30 }
 0x171   : > { %v885_v38 = vmax.f32 %v2587_v36, %v2589_v37 }
 0x172   : > { %vm816_vm4 = vcmp.ne.s32.totalorder %v784_v24, 0  ;;  %vm818_vm6 = vcmp.ne.s32.totalorder %v786_v44, 0  ;;  %vm819_vm7 = vcmp.ne.s32.totalorder %v787_v45, 0 }
 0x173   : > { %886 = vmax.xlane.f32.xlu2 %v885_v38 }
 0x176   : > { %v559_v57 = vpop.f32.mrf.mxu0 }
 0x177   : > { %v624_v58 = vpop.f32.mrf.mxu1  ;;  %v2604_v5 = vsel %vm812_vm14, -1e+18, %v559_v57 }
 0x178   : > { %v2606_v8 = vsel %vm813_vm15, -1e+18, %v624_v58 }
 0x179   : > { %v888_v9 = vmax.f32 %v2604_v5, %v2606_v8 }
 0x17b   : > { %889 = vmax.xlane.f32.xlu0 %v888_v9 }
 0x17e   : > { %v562_v18 = vpop.f32.mrf.mxu0 }
 0x17f   : > { %v627_v19 = vpop.f32.mrf.mxu1  ;;  %v2613_v21 = vsel %vm814_vm1, -1e+18, %v562_v18 }
 0x180   : > { %v2615_v22 = vsel %vm815_vm2, -1e+18, %v627_v19 }
 0x181   : > { %v891_v23 = vmax.f32 %v2613_v21, %v2615_v22 }
 0x183   : > { %892 = vmax.xlane.f32.xlu1 %v891_v23 }
 0x186   : > { %v565_v31 = vpop.f32.mrf.mxu0 }
 0x187   : > { %v630_v34 = vpop.f32.mrf.mxu1  ;;  %v2620_v35 = vsel %vm816_vm4, -1e+18, %v565_v31 }
 0x188   : > { %v2622_v38 = vsel %vm817_vm5, -1e+18, %v630_v34 }
 0x189   : > { %v894_v43 = vmax.f32 %v2620_v35, %v2622_v38 }
 0x18b   : > { %895 = vmax.xlane.f32.xlu2 %v894_v43 }
 0x18e   : > { %v854_v48 = vpop.xlane.xlu0 %853  ;;  %v568_v61 = vpop.f32.mrf.mxu0 }
 0x18f   : > { %v900_v49 = vsub.f32 %v2444_v27, %v854_v48  ;;  %v901_v50 = vsub.f32 %v2446_v28, %v854_v48  ;;  %v633_v51 = vpop.f32.mrf.mxu1  ;;  %v2628_v52 = vsel %vm818_vm6, -1e+18, %v568_v61 }
 0x190   : > { %v2630_v55 = vsel %vm819_vm7, -1e+18, %v633_v51 }
 0x191   : > { %v932_v56 = vmul.f32 1.442695, %v900_v49  ;;  %v934_v57 = vmul.f32 1.442695, %v901_v50  ;;  %v897_v58 = vmax.f32 %v2628_v52, %v2630_v55 }
 0x193   : > { %1744 = vpow2.f32 %v932_v56  ;;  %898 = vmax.xlane.f32.xlu0 %v897_v58 }
 0x194   : > { %1746 = vpow2.f32 %v934_v57 }
 0x196   : > { %v857_v59 = vpop.xlane.xlu0 %856 }
 0x197   : > { %v902_v63 = vsub.f32 %v2459_v41, %v857_v59  ;;  %v903_v27 = vsub.f32 %v2461_v42, %v857_v59 }
 0x199   : > { %v2636_v28 = vpop.eup %1744  ;;  %v936_v0 = vmul.f32 1.442695, %v902_v63  ;;  %v938_v1 = vmul.f32 1.442695, %v903_v27 }
 0x19a   : > { %v2638_v4 = vpop.eup %1746  ;;  %1012 = vmatmul.f32.vlgmr.msra.gmra.mxu2 %v2636_v28 }
 0x19b   : > { %1748 = vpow2.f32 %v936_v0  ;;  %1077 = vmatmul.f32.vlgmr.msra.gmra.mxu3 %v2638_v4  ;;  %v1126_v9 = vadd.f32 %v2638_v4, %v2636_v28 }
 0x19c   : > { %1750 = vpow2.f32 %v938_v1 }
 0x19d   : > { %1127 = vadd.xlane.f32.xlu1 %v1126_v9 }
 0x19e   : > { %v860_v10 = vpop.xlane.xlu1 %859 }
 0x19f   : > { %v904_v41 = vsub.f32 %v2468_v53, %v860_v10  ;;  %v905_v42 = vsub.f32 %v2470_v54, %v860_v10 }
 0x1a1   : > { %v2646_v11 = vpop.eup %1748  ;;  %v940_v12 = vmul.f32 1.442695, %v904_v41  ;;  %v942_v15 = vmul.f32 1.442695, %v905_v42 }
 0x1a2   : > { %v2648_v25 = vpop.eup %1750  ;;  %1015 = vmatmul.f32.gmra.mxu2 %v2646_v11 }
 0x1a3   : > { %1752 = vpow2.f32 %v940_v12  ;;  %1080 = vmatmul.f32.gmra.mxu3 %v2648_v25  ;;  %v1129_v26 = vadd.f32 %v2648_v25, %v2646_v11 }
 0x1a4   : > { %1754 = vpow2.f32 %v942_v15 }
 0x1a5   : > { %1130 = vadd.xlane.f32.xlu2 %v1129_v26 }
 0x1a6   : > { %v863_v18 = vpop.xlane.xlu1 %862 }
 0x1a7   : > { %v906_v53 = vsub.f32 %v2477_v2, %v863_v18  ;;  %v907_v54 = vsub.f32 %v2479_v3, %v863_v18 }
 0x1a9   : > { %v2656_v19 = vpop.eup %1752  ;;  %v944_v20 = vmul.f32 1.442695, %v906_v53  ;;  %v946_v23 = vmul.f32 1.442695, %v907_v54 }
 0x1aa   : > { %v2658_v24 = vpop.eup %1754  ;;  %1018 = vmatmul.f32.gmra.mxu2 %v2656_v19 }
 0x1ab   : > { %1756 = vpow2.f32 %v944_v20  ;;  %1083 = vmatmul.f32.gmra.mxu3 %v2658_v24  ;;  %v1132_v29 = vadd.f32 %v2658_v24, %v2656_v19 }
 0x1ac   : > { %1758 = vpow2.f32 %v946_v23 }
 0x1ad   : > { %1133 = vadd.xlane.f32.xlu0 %v1132_v29 }
 0x1ae   : > { %v866_v30 = vpop.xlane.xlu2 %865 }
 0x1af   : > { %v908_v2 = vsub.f32 %v2488_v16, %v866_v30  ;;  %v909_v3 = vsub.f32 %v2490_v17, %v866_v30 }
 0x1b1   : > { %v2666_v31 = vpop.eup %1756  ;;  %v948_v34 = vmul.f32 1.442695, %v908_v2  ;;  %v950_v43 = vmul.f32 1.442695, %v909_v3 }
 0x1b2   : > { %v2668_v44 = vpop.eup %1758  ;;  %1021 = vmatmul.f32.gmra.mxu2 %v2666_v31 }
 0x1b3   : > { %1760 = vpow2.f32 %v948_v34  ;;  %1086 = vmatmul.f32.gmra.mxu3 %v2668_v44  ;;  %v1135_v45 = vadd.f32 %v2668_v44, %v2666_v31 }
 0x1b4   : > { %1762 = vpow2.f32 %v950_v43 }
 0x1b5   : > { %1136 = vadd.xlane.f32.xlu1 %v1135_v45 }
 0x1b6   : > { %v869_v48 = vpop.xlane.xlu2 %868 }
 0x1b7   : > { %v910_v16 = vsub.f32 %v2503_v32, %v869_v48  ;;  %v911_v17 = vsub.f32 %v2505_v33, %v869_v48 }
 0x1b9   : > { %v2676_v49 = vpop.eup %1760  ;;  %v952_v50 = vmul.f32 1.442695, %v910_v16  ;;  %v954_v61 = vmul.f32 1.442695, %v911_v17 }
 0x1ba   : > { %v2678_v51 = vpop.eup %1762  ;;  %1024 = vmatmul.f32.gmra.mxu2 %v2676_v49 }
 0x1bb   : > { %1764 = vpow2.f32 %v952_v50  ;;  %1089 = vmatmul.f32.gmra.mxu3 %v2678_v51  ;;  %v1138_v56 = vadd.f32 %v2678_v51, %v2676_v49 }
 0x1bc   : > { %1766 = vpow2.f32 %v954_v61 }
 0x1bd   : > { %1139 = vadd.xlane.f32.xlu2 %v1138_v56 }
 0x1be   : > { %v872_v57 = vpop.xlane.xlu0 %871 }
 0x1bf   : > { %v912_v32 = vsub.f32 %v2512_v46, %v872_v57  ;;  %v913_v33 = vsub.f32 %v2514_v47, %v872_v57 }
 0x1c1   : > { %v2686_v58 = vpop.eup %1764  ;;  %v956_v59 = vmul.f32 1.442695, %v912_v32  ;;  %v958_v63 = vmul.f32 1.442695, %v913_v33 }
 0x1c2   : > { %v2688_v27 = vpop.eup %1766  ;;  %1027 = vmatmul.f32.gmra.mxu2 %v2686_v58 }
 0x1c3   : > { %1768 = vpow2.f32 %v956_v59  ;;  %1092 = vmatmul.f32.gmra.mxu3 %v2688_v27  ;;  %v1141_v0 = vadd.f32 %v2688_v27, %v2686_v58 }
 0x1c4   : > { %1770 = vpow2.f32 %v958_v63 }
 0x1c5   : > { %1142 = vadd.xlane.f32.xlu0 %v1141_v0 }
 0x1c6   : > { %v875_v1 = vpop.xlane.xlu1 %874 }
 0x1c7   : > { %v914_v46 = vsub.f32 %v2521_v60, %v875_v1  ;;  %v915_v47 = vsub.f32 %v2523_v62, %v875_v1 }
 0x1c9   : > { %v2696_v9 = vpop.eup %1768  ;;  %v960_v10 = vmul.f32 1.442695, %v914_v46  ;;  %v962_v41 = vmul.f32 1.442695, %v915_v47 }
 0x1ca   : > { %v2698_v42 = vpop.eup %1770  ;;  %1030 = vmatmul.f32.gmra.mxu2 %v2696_v9 }
 0x1cb   : > { %1772 = vpow2.f32 %v960_v10  ;;  %1095 = vmatmul.f32.gmra.mxu3 %v2698_v42  ;;  %v1144_v12 = vadd.f32 %v2698_v42, %v2696_v9 }
 0x1cc   : > { %1774 = vpow2.f32 %v962_v41 }
 0x1cd   : > { %1145 = vadd.xlane.f32.xlu1 %v1144_v12 }
 0x1ce   : > { %v878_v15 = vpop.xlane.xlu2 %877 }
 0x1cf   : > { %v916_v60 = vsub.f32 %v2532_v13, %v878_v15  ;;  %v917_v62 = vsub.f32 %v2534_v14, %v878_v15 }
 0x1d1   : > { %v2706_v26 = vpop.eup %1772  ;;  %v964_v18 = vmul.f32 1.442695, %v916_v60  ;;  %v966_v53 = vmul.f32 1.442695, %v917_v62 }
 0x1d2   : > { %v2708_v54 = vpop.eup %1774  ;;  %1033 = vmatmul.f32.gmra.mxu2 %v2706_v26 }
 0x1d3   : > { %1776 = vpow2.f32 %v964_v18  ;;  %1098 = vmatmul.f32.gmra.mxu3 %v2708_v54  ;;  %v1147_v20 = vadd.f32 %v2708_v54, %v2706_v26 }
 0x1d4   : > { %1778 = vpow2.f32 %v966_v53 }
 0x1d5   : > { %1148 = vadd.xlane.f32.xlu2 %v1147_v20 }
 0x1d6   : > { %v881_v23 = vpop.xlane.xlu0 %880 }
 0x1d7   : > { %v918_v13 = vsub.f32 %v2553_v39, %v881_v23  ;;  %v919_v14 = vsub.f32 %v2555_v40, %v881_v23 }
 0x1d9   : > { %v2716_v29 = vpop.eup %1776  ;;  %v968_v30 = vmul.f32 1.442695, %v918_v13  ;;  %v970_v2 = vmul.f32 1.442695, %v919_v14 }
 0x1da   : > { %v2718_v3 = vpop.eup %1778  ;;  %1036 = vmatmul.f32.gmra.mxu2 %v2716_v29 }
 0x1db   : > { %1780 = vpow2.f32 %v968_v30  ;;  %1101 = vmatmul.f32.gmra.mxu3 %v2718_v3  ;;  %v1150_v34 = vadd.f32 %v2718_v3, %v2716_v29 }
 0x1dc   : > { %1782 = vpow2.f32 %v970_v2 }
 0x1dd   : > { %1151 = vadd.xlane.f32.xlu0 %v1150_v34 }
 0x1de   : > { %v884_v43 = vpop.xlane.xlu1 %883 }
 0x1df   : > { %v920_v39 = vsub.f32 %v2570_v6, %v884_v43  ;;  %v921_v40 = vsub.f32 %v2572_v7, %v884_v43 }
 0x1e1   : > { %v2726_v45 = vpop.eup %1780  ;;  %v972_v48 = vmul.f32 1.442695, %v920_v39  ;;  %v974_v16 = vmul.f32 1.442695, %v921_v40 }
 0x1e2   : > { %v2728_v17 = vpop.eup %1782  ;;  %1039 = vmatmul.f32.gmra.mxu2 %v2726_v45 }
 0x1e3   : > { %1784 = vpow2.f32 %v972_v48  ;;  %1104 = vmatmul.f32.gmra.mxu3 %v2728_v17  ;;  %v1153_v50 = vadd.f32 %v2728_v17, %v2726_v45 }
 0x1e4   : > { %1786 = vpow2.f32 %v974_v16 }
 0x1e5   : > { %1154 = vadd.xlane.f32.xlu1 %v1153_v50 }
 0x1e6   : > { %v887_v61 = vpop.xlane.xlu2 %886 }
 0x1e7   : > { %v922_v6 = vsub.f32 %v2587_v36, %v887_v61  ;;  %v923_v7 = vsub.f32 %v2589_v37, %v887_v61 }
 0x1e9   : > { %v2736_v56 = vpop.eup %1784  ;;  %v976_v57 = vmul.f32 1.442695, %v922_v6  ;;  %v978_v32 = vmul.f32 1.442695, %v923_v7 }
 0x1ea   : > { %v2738_v33 = vpop.eup %1786  ;;  %1042 = vmatmul.f32.gmra.mxu2 %v2736_v56 }
 0x1eb   : > { %1788 = vpow2.f32 %v976_v57  ;;  %1107 = vmatmul.f32.gmra.mxu3 %v2738_v33  ;;  %v1156_v59 = vadd.f32 %v2738_v33, %v2736_v56 }
 0x1ec   : > { %1790 = vpow2.f32 %v978_v32 }
 0x1ed   : > { %1157 = vadd.xlane.f32.xlu2 %v1156_v59 }
 0x1ee   : > { %v890_v63 = vpop.xlane.xlu0 %889 }
 0x1ef   : > { %v924_v36 = vsub.f32 %v2604_v5, %v890_v63  ;;  %v925_v37 = vsub.f32 %v2606_v8, %v890_v63 }
 0x1f1   : > { %v2746_v0 = vpop.eup %1788  ;;  %v980_v1 = vmul.f32 1.442695, %v924_v36  ;;  %v982_v46 = vmul.f32 1.442695, %v925_v37 }
 0x1f2   : > { %v2748_v47 = vpop.eup %1790  ;;  %1045 = vmatmul.f32.gmra.mxu2 %v2746_v0 }
 0x1f3   : > { %1792 = vpow2.f32 %v980_v1  ;;  %1110 = vmatmul.f32.gmra.mxu3 %v2748_v47  ;;  %v1159_v10 = vadd.f32 %v2748_v47, %v2746_v0 }
 0x1f4   : > { %1794 = vpow2.f32 %v982_v46 }
 0x1f5   : > { %1160 = vadd.xlane.f32.xlu0 %v1159_v10 }
 0x1f6   : > { %v893_v41 = vpop.xlane.xlu1 %892 }
 0x1f7   : > { %v926_v5 = vsub.f32 %v2613_v21, %v893_v41  ;;  %v927_v8 = vsub.f32 %v2615_v22, %v893_v41 }
 0x1f9   : > { %v2756_v12 = vpop.eup %1792  ;;  %v984_v15 = vmul.f32 1.442695, %v926_v5  ;;  %v986_v60 = vmul.f32 1.442695, %v927_v8 }
 0x1fa   : > { %v2758_v62 = vpop.eup %1794  ;;  %1048 = vmatmul.f32.gmra.mxu2 %v2756_v12 }
 0x1fb   : > { %1796 = vpow2.f32 %v984_v15  ;;  %1113 = vmatmul.f32.gmra.mxu3 %v2758_v62  ;;  %v1162_v18 = vadd.f32 %v2758_v62, %v2756_v12 }
 0x1fc   : > { %1798 = vpow2.f32 %v986_v60 }
 0x1fd   : > { %1163 = vadd.xlane.f32.xlu1 %v1162_v18 }
 0x1fe   : > { %v896_v53 = vpop.xlane.xlu2 %895 }
 0x1ff   : > { %v928_v21 = vsub.f32 %v2620_v35, %v896_v53  ;;  %v929_v22 = vsub.f32 %v2622_v38, %v896_v53 }
 0x201   : > { %v2766_v20 = vpop.eup %1796  ;;  %v988_v23 = vmul.f32 1.442695, %v928_v21  ;;  %v990_v13 = vmul.f32 1.442695, %v929_v22 }
 0x202   : > { %v2768_v14 = vpop.eup %1798  ;;  %1051 = vmatmul.f32.gmra.mxu2 %v2766_v20 }
 0x203   : > { %1800 = vpow2.f32 %v988_v23  ;;  %1116 = vmatmul.f32.gmra.mxu3 %v2768_v14  ;;  %v1165_v30 = vadd.f32 %v2768_v14, %v2766_v20 }
 0x204   : > { %1802 = vpow2.f32 %v990_v13 }
 0x205   : > { %1166 = vadd.xlane.f32.xlu2 %v1165_v30 }
 0x206   : > { %v899_v2 = vpop.xlane.xlu0 %898 }
 0x207   : > { %v930_v35 = vsub.f32 %v2628_v52, %v899_v2  ;;  %v931_v38 = vsub.f32 %v2630_v55, %v899_v2 }
 0x209   : > { %v2776_v34 = vpop.eup %1800  ;;  %v992_v43 = vmul.f32 1.442695, %v930_v35  ;;  %v994_v39 = vmul.f32 1.442695, %v931_v38 }
 0x20a   : > { %v2778_v40 = vpop.eup %1802  ;;  %1054 = vmatmul.f32.gmra.mxu2 %v2776_v34 }
 0x20b   : > { %1804 = vpow2.f32 %v992_v43  ;;  %1119 = vmatmul.f32.gmra.mxu3 %v2778_v40  ;;  %v1168_v48 = vadd.f32 %v2778_v40, %v2776_v34 }
 0x20c   : > { %1806 = vpow2.f32 %v994_v39 }
 0x20d   : > { %1169 = vadd.xlane.f32.xlu0 %v1168_v48 }
 0x210   : > { %v1128_v52 = vpop.xlane.xlu1 %1127 }
 0x211   : > { %v2784_v16 = vpop.eup %1804  ;;  %1808 = vrcp.f32 %v1128_v52 }
 0x212   : > { %v2786_v55 = vpop.eup %1806  ;;  %1057 = vmatmul.f32.gmra.mxu2 %v2784_v16 }
 0x213   : > { %1122 = vmatmul.f32.gmra.mxu3 %v2786_v55  ;;  %v1171_v50 = vadd.f32 %v2786_v55, %v2784_v16 }
 0x215   : > { %1172 = vadd.xlane.f32.xlu1 %v1171_v50 }
 0x217   : > { %v1809_v61 = vpop.eup %1808 }
 0x218   : > { %v1190_v6 = vmul.f32 %v1809_v61, %v1128_v52  ;;  %v1131_v7 = vpop.xlane.xlu2 %1130 }
 0x219   : > { %1810 = vrcp.f32 %v1131_v7 }
 0x21a   : > { %v1206_v57 = vsub.f32 2.0, %v1190_v6 }
 0x21c   : > { %v1222_v32 = vmul.f32 %v1809_v61, %v1206_v57 }
 0x21d   : > { %v1013_v59 = vpop.f32.mrf.mxu2 }
 0x21e   : > { %v1238_v63 = vmul.f32 %v2636_v28, %v1222_v32  ;;  %v1239_v36 = vmul.f32 %v2638_v4, %v1222_v32  ;;  %v1078_v37 = vpop.f32.mrf.mxu3 }
 0x21f   : > { %v1811_v1 = vpop.eup %1810  ;;  %v1079_v46 = vadd.f32 %v1078_v37, %v1013_v59 }
 0x220   : > { %1270 = vst [vmem:[%s2795_s13] sm:$0xff] %v1238_v63  ;;  %v1191_v10 = vmul.f32 %v1811_v1, %v1131_v7  ;;  %v1134_v41 = vpop.xlane.xlu0 %1133 }
 0x221   : > { %1271 = vst [vmem:[%s2795_s13 + $0x8] sm:$0xff] %v1239_v36  ;;  %v1302_v5 = vmul.f32 %v1222_v32, %v1079_v46  ;;  %1812 = vrcp.f32 %v1134_v41 }
 0x222   : > { %v1207_v8 = vsub.f32 2.0, %v1191_v10 }
 0x223   : > { %1318 = vst [vmem:[%s2801_s5] sm:$0xff] %v1302_v5 }
 0x224   : > { %v1223_v28 = vmul.f32 %v1811_v1, %v1207_v8 }
 0x225   : > { %v1016_v4 = vpop.f32.mrf.mxu2 }
 0x226   : > { %v1240_v15 = vmul.f32 %v2646_v11, %v1223_v28  ;;  %v1241_v60 = vmul.f32 %v2648_v25, %v1223_v28  ;;  %v1081_v18 = vpop.f32.mrf.mxu3 }
 0x227   : > { %v1813_v53 = vpop.eup %1812  ;;  %v1082_v21 = vadd.f32 %v1081_v18, %v1016_v4 }
 0x228   : > { %1272 = vst [vmem:[%s2795_s13 + $0x10] sm:$0xff] %v1240_v15  ;;  %v1192_v22 = vmul.f32 %v1813_v53, %v1134_v41  ;;  %v1137_v23 = vpop.xlane.xlu1 %1136 }
 0x229   : > { %1273 = vst [vmem:[%s2795_s13 + $0x18] sm:$0xff] %v1241_v60  ;;  %v1303_v13 = vmul.f32 %v1223_v28, %v1082_v21  ;;  %1814 = vrcp.f32 %v1137_v23 }
 0x22a   : > { %v1208_v30 = vsub.f32 2.0, %v1192_v22 }
 0x22b   : > { %1319 = vst [vmem:[%s2801_s5 + $0x8] sm:$0xff] %v1303_v13 }
 0x22c   : > { %v1224_v2 = vmul.f32 %v1813_v53, %v1208_v30 }
 0x22d   : > { %v1019_v35 = vpop.f32.mrf.mxu2 }
 0x22e   : > { %v1242_v11 = vmul.f32 %v2656_v19, %v1224_v2  ;;  %v1243_v25 = vmul.f32 %v2658_v24, %v1224_v2  ;;  %v1084_v38 = vpop.f32.mrf.mxu3 }
 0x22f   : > { %v1815_v43 = vpop.eup %1814  ;;  %v1085_v39 = vadd.f32 %v1084_v38, %v1019_v35 }
 0x230   : > { %1274 = vst [vmem:[%s2795_s13 + $0x20] sm:$0xff] %v1242_v11  ;;  %v1193_v48 = vmul.f32 %v1815_v43, %v1137_v23  ;;  %v1140_v52 = vpop.xlane.xlu2 %1139 }
 0x231   : > { %1275 = vst [vmem:[%s2795_s13 + $0x28] sm:$0xff] %v1243_v25  ;;  %v1304_v50 = vmul.f32 %v1224_v2, %v1085_v39  ;;  %1816 = vrcp.f32 %v1140_v52 }
 0x232   : > { %v1209_v61 = vsub.f32 2.0, %v1193_v48 }
 0x233   : > { %1320 = vst [vmem:[%s2801_s5 + $0x10] sm:$0xff] %v1304_v50 }
 0x234   : > { %v1225_v6 = vmul.f32 %v1815_v43, %v1209_v61 }
 0x235   : > { %v1022_v7 = vpop.f32.mrf.mxu2 }
 0x236   : > { %v1244_v19 = vmul.f32 %v2666_v31, %v1225_v6  ;;  %v1245_v24 = vmul.f32 %v2668_v44, %v1225_v6  ;;  %v1087_v57 = vpop.f32.mrf.mxu3 }
 0x237   : > { %v1817_v32 = vpop.eup %1816  ;;  %v1088_v59 = vadd.f32 %v1087_v57, %v1022_v7 }
 0x238   : > { %1276 = vst [vmem:[%s2795_s13 + $0x30] sm:$0xff] %v1244_v19  ;;  %v1194_v63 = vmul.f32 %v1817_v32, %v1140_v52  ;;  %v1143_v36 = vpop.xlane.xlu0 %1142 }
 0x239   : > { %1277 = vst [vmem:[%s2795_s13 + $0x38] sm:$0xff] %v1245_v24  ;;  %v1305_v37 = vmul.f32 %v1225_v6, %v1088_v59  ;;  %1818 = vrcp.f32 %v1143_v36 }
 0x23a   : > { %v1210_v1 = vsub.f32 2.0, %v1194_v63 }
 0x23b   : > { %1321 = vst [vmem:[%s2801_s5 + $0x18] sm:$0xff] %v1305_v37 }
 0x23c   : > { %v1226_v46 = vmul.f32 %v1817_v32, %v1210_v1 }
 0x23d   : > { %v1025_v10 = vpop.f32.mrf.mxu2 }
 0x23e   : > { %v1246_v31 = vmul.f32 %v2676_v49, %v1226_v46  ;;  %v1247_v44 = vmul.f32 %v2678_v51, %v1226_v46  ;;  %v1090_v41 = vpop.f32.mrf.mxu3 }
 0x23f   : > { %v1819_v5 = vpop.eup %1818  ;;  %v1091_v8 = vadd.f32 %v1090_v41, %v1025_v10 }
 0x240   : > { %1278 = vst [vmem:[%s2795_s13 + $0x40] sm:$0xff] %v1246_v31  ;;  %v1195_v28 = vmul.f32 %v1819_v5, %v1143_v36  ;;  %v1146_v4 = vpop.xlane.xlu1 %1145 }
 0x241   : > { %1279 = vst [vmem:[%s2795_s13 + $0x48] sm:$0xff] %v1247_v44  ;;  %v1306_v15 = vmul.f32 %v1226_v46, %v1091_v8  ;;  %1820 = vrcp.f32 %v1146_v4 }
 0x242   : > { %v1211_v60 = vsub.f32 2.0, %v1195_v28 }
 0x243   : > { %1322 = vst [vmem:[%s2801_s5 + $0x20] sm:$0xff] %v1306_v15 }
 0x244   : > { %v1227_v18 = vmul.f32 %v1819_v5, %v1211_v60 }
 0x245   : > { %v1028_v53 = vpop.f32.mrf.mxu2 }
 0x246   : > { %v1248_v49 = vmul.f32 %v2686_v58, %v1227_v18  ;;  %v1249_v51 = vmul.f32 %v2688_v27, %v1227_v18  ;;  %v1093_v21 = vpop.f32.mrf.mxu3 }
 0x247   : > { %v1821_v22 = vpop.eup %1820  ;;  %v1094_v23 = vadd.f32 %v1093_v21, %v1028_v53 }
 0x248   : > { %1280 = vst [vmem:[%s2795_s13 + $0x50] sm:$0xff] %v1248_v49  ;;  %v1196_v13 = vmul.f32 %v1821_v22, %v1146_v4  ;;  %v1149_v30 = vpop.xlane.xlu2 %1148 }
 0x249   : > { %1281 = vst [vmem:[%s2795_s13 + $0x58] sm:$0xff] %v1249_v51  ;;  %v1307_v2 = vmul.f32 %v1227_v18, %v1094_v23  ;;  %1822 = vrcp.f32 %v1149_v30 }
 0x24a   : > { %v1212_v35 = vsub.f32 2.0, %v1196_v13 }
 0x24b   : > { %1323 = vst [vmem:[%s2801_s5 + $0x28] sm:$0xff] %v1307_v2 }
 0x24c   : > { %v1228_v11 = vmul.f32 %v1821_v22, %v1212_v35 }
 0x24d   : > { %v1031_v25 = vpop.f32.mrf.mxu2 }
 0x24e   : > { %v1250_v58 = vmul.f32 %v2696_v9, %v1228_v11  ;;  %v1251_v27 = vmul.f32 %v2698_v42, %v1228_v11  ;;  %v1096_v38 = vpop.f32.mrf.mxu3 }
 0x24f   : > { %v1823_v43 = vpop.eup %1822  ;;  %v1097_v39 = vadd.f32 %v1096_v38, %v1031_v25 }
 0x250   : > { %1282 = vst [vmem:[%s2795_s13 + $0x60] sm:$0xff] %v1250_v58  ;;  %v1197_v48 = vmul.f32 %v1823_v43, %v1149_v30  ;;  %v1152_v52 = vpop.xlane.xlu0 %1151 }
 0x251   : > { %1283 = vst [vmem:[%s2795_s13 + $0x68] sm:$0xff] %v1251_v27  ;;  %v1308_v50 = vmul.f32 %v1228_v11, %v1097_v39  ;;  %1824 = vrcp.f32 %v1152_v52 }
 0x252   : > { %v1213_v61 = vsub.f32 2.0, %v1197_v48 }
 0x253   : > { %1324 = vst [vmem:[%s2801_s5 + $0x30] sm:$0xff] %v1308_v50 }
 0x254   : > { %v1229_v6 = vmul.f32 %v1823_v43, %v1213_v61 }
 0x255   : > { %v1034_v7 = vpop.f32.mrf.mxu2 }
 0x256   : > { %v1252_v9 = vmul.f32 %v2706_v26, %v1229_v6  ;;  %v1253_v42 = vmul.f32 %v2708_v54, %v1229_v6  ;;  %v1099_v19 = vpop.f32.mrf.mxu3 }
 0x257   : > { %v1825_v24 = vpop.eup %1824  ;;  %v1100_v57 = vadd.f32 %v1099_v19, %v1034_v7 }
 0x258   : > { %1284 = vst [vmem:[%s2795_s13 + $0x70] sm:$0xff] %v1252_v9  ;;  %v1198_v32 = vmul.f32 %v1825_v24, %v1152_v52  ;;  %v1155_v59 = vpop.xlane.xlu1 %1154 }
 0x259   : > { %1285 = vst [vmem:[%s2795_s13 + $0x78] sm:$0xff] %v1253_v42  ;;  %v1309_v63 = vmul.f32 %v1229_v6, %v1100_v57  ;;  %1826 = vrcp.f32 %v1155_v59 }
 0x25a   : > { %v1214_v36 = vsub.f32 2.0, %v1198_v32 }
 0x25b   : > { %1325 = vst [vmem:[%s2801_s5 + $0x38] sm:$0xff] %v1309_v63 }
 0x25c   : > { %v1230_v37 = vmul.f32 %v1825_v24, %v1214_v36 }
 0x25d   : > { %v1037_v1 = vpop.f32.mrf.mxu2 }
 0x25e   : > { %v1254_v26 = vmul.f32 %v2716_v29, %v1230_v37  ;;  %v1255_v54 = vmul.f32 %v2718_v3, %v1230_v37  ;;  %v1102_v46 = vpop.f32.mrf.mxu3 }
 0x25f   : > { %v1827_v10 = vpop.eup %1826  ;;  %v1103_v31 = vadd.f32 %v1102_v46, %v1037_v1 }
 0x260   : > { %1286 = vst [vmem:[%s2795_s13 + $0x80] sm:$0xff] %v1254_v26  ;;  %v1199_v44 = vmul.f32 %v1827_v10, %v1155_v59  ;;  %v1158_v41 = vpop.xlane.xlu2 %1157 }
 0x261   : > { %1287 = vst [vmem:[%s2795_s13 + $0x88] sm:$0xff] %v1255_v54  ;;  %v1310_v5 = vmul.f32 %v1230_v37, %v1103_v31  ;;  %1828 = vrcp.f32 %v1158_v41 }
 0x262   : > { %v1215_v8 = vsub.f32 2.0, %v1199_v44 }
 0x263   : > { %1326 = vst [vmem:[%s2801_s5 + $0x40] sm:$0xff] %v1310_v5 }
 0x264   : > { %v1231_v28 = vmul.f32 %v1827_v10, %v1215_v8 }
 0x265   : > { %v1040_v4 = vpop.f32.mrf.mxu2 }
 0x266   : > { %v1256_v29 = vmul.f32 %v2726_v45, %v1231_v28  ;;  %v1257_v3 = vmul.f32 %v2728_v17, %v1231_v28  ;;  %v1105_v15 = vpop.f32.mrf.mxu3 }
 0x267   : > { %v1829_v60 = vpop.eup %1828  ;;  %v1106_v18 = vadd.f32 %v1105_v15, %v1040_v4 }
 0x268   : > { %1288 = vst [vmem:[%s2795_s13 + $0x90] sm:$0xff] %v1256_v29  ;;  %v1200_v53 = vmul.f32 %v1829_v60, %v1158_v41  ;;  %v1161_v49 = vpop.xlane.xlu0 %1160 }
 0x269   : > { %1289 = vst [vmem:[%s2795_s13 + $0x98] sm:$0xff] %v1257_v3  ;;  %v1311_v51 = vmul.f32 %v1231_v28, %v1106_v18  ;;  %1830 = vrcp.f32 %v1161_v49 }
 0x26a   : > { %v1216_v21 = vsub.f32 2.0, %v1200_v53 }
 0x26b   : > { %1327 = vst [vmem:[%s2801_s5 + $0x48] sm:$0xff] %v1311_v51 }
 0x26c   : > { %v1232_v22 = vmul.f32 %v1829_v60, %v1216_v21 }
 0x26d   : > { %v1043_v23 = vpop.f32.mrf.mxu2 }
 0x26e   : > { %v1258_v45 = vmul.f32 %v2736_v56, %v1232_v22  ;;  %v1259_v17 = vmul.f32 %v2738_v33, %v1232_v22  ;;  %v1108_v13 = vpop.f32.mrf.mxu3 }
 0x26f   : > { %v1831_v30 = vpop.eup %1830  ;;  %v1109_v2 = vadd.f32 %v1108_v13, %v1043_v23 }
 0x270   : > { %1290 = vst [vmem:[%s2795_s13 + $0xa0] sm:$0xff] %v1258_v45  ;;  %v1201_v35 = vmul.f32 %v1831_v30, %v1161_v49  ;;  %v1164_v11 = vpop.xlane.xlu1 %1163 }
 0x271   : > { %1291 = vst [vmem:[%s2795_s13 + $0xa8] sm:$0xff] %v1259_v17  ;;  %v1312_v25 = vmul.f32 %v1232_v22, %v1109_v2  ;;  %1832 = vrcp.f32 %v1164_v11 }
 0x272   : > { %v1217_v58 = vsub.f32 2.0, %v1201_v35 }
 0x273   : > { %1328 = vst [vmem:[%s2801_s5 + $0x50] sm:$0xff] %v1312_v25 }
 0x274   : > { %v1233_v27 = vmul.f32 %v1831_v30, %v1217_v58 }
 0x275   : > { %v1046_v38 = vpop.f32.mrf.mxu2 }
 0x276   : > { %v1260_v56 = vmul.f32 %v2746_v0, %v1233_v27  ;;  %v1261_v33 = vmul.f32 %v2748_v47, %v1233_v27  ;;  %v1111_v43 = vpop.f32.mrf.mxu3 }
 0x277   : > { %v1833_v39 = vpop.eup %1832  ;;  %v1112_v48 = vadd.f32 %v1111_v43, %v1046_v38 }
 0x278   : > { %1292 = vst [vmem:[%s2795_s13 + $0xb0] sm:$0xff] %v1260_v56  ;;  %v1202_v52 = vmul.f32 %v1833_v39, %v1164_v11  ;;  %v1167_v50 = vpop.xlane.xlu2 %1166 }
 0x279   : > { %1293 = vst [vmem:[%s2795_s13 + $0xb8] sm:$0xff] %v1261_v33  ;;  %v1313_v61 = vmul.f32 %v1233_v27, %v1112_v48  ;;  %1834 = vrcp.f32 %v1167_v50 }
 0x27a   : > { %v1218_v6 = vsub.f32 2.0, %v1202_v52 }
 0x27b   : > { %1329 = vst [vmem:[%s2801_s5 + $0x58] sm:$0xff] %v1313_v61 }
 0x27c   : > { %v1234_v7 = vmul.f32 %v1833_v39, %v1218_v6 }
 0x27d   : > { %v1049_v9 = vpop.f32.mrf.mxu2 }
 0x27e   : > { %v1262_v0 = vmul.f32 %v2756_v12, %v1234_v7  ;;  %v1263_v47 = vmul.f32 %v2758_v62, %v1234_v7  ;;  %v1114_v42 = vpop.f32.mrf.mxu3 }
 0x27f   : > { %v1835_v19 = vpop.eup %1834  ;;  %v1115_v24 = vadd.f32 %v1114_v42, %v1049_v9 }
 0x280   : > { %1294 = vst [vmem:[%s2795_s13 + $0xc0] sm:$0xff] %v1262_v0  ;;  %v1203_v57 = vmul.f32 %v1835_v19, %v1167_v50  ;;  %v1170_v32 = vpop.xlane.xlu0 %1169 }
 0x281   : > { %1295 = vst [vmem:[%s2795_s13 + $0xc8] sm:$0xff] %v1263_v47  ;;  %v1314_v59 = vmul.f32 %v1234_v7, %v1115_v24  ;;  %1836 = vrcp.f32 %v1170_v32 }
 0x282   : > { %v1219_v63 = vsub.f32 2.0, %v1203_v57 }
 0x283   : > { %1330 = vst [vmem:[%s2801_s5 + $0x60] sm:$0xff] %v1314_v59 }
 0x284   : > { %v1235_v36 = vmul.f32 %v1835_v19, %v1219_v63 }
 0x285   : > { %v1052_v12 = vpop.f32.mrf.mxu2 }
 0x286   : > { %v1264_v62 = vmul.f32 %v2766_v20, %v1235_v36  ;;  %v1265_v37 = vmul.f32 %v2768_v14, %v1235_v36  ;;  %v1117_v1 = vpop.f32.mrf.mxu3 }
 0x287   : > { %v1837_v26 = vpop.eup %1836  ;;  %v1118_v54 = vadd.f32 %v1117_v1, %v1052_v12 }
 0x288   : > { %1296 = vst [vmem:[%s2795_s13 + $0xd0] sm:$0xff] %v1264_v62  ;;  %v1204_v46 = vmul.f32 %v1837_v26, %v1170_v32  ;;  %v1173_v10 = vpop.xlane.xlu1 %1172 }
 0x289   : > { %1297 = vst [vmem:[%s2795_s13 + $0xd8] sm:$0xff] %v1265_v37  ;;  %v1315_v31 = vmul.f32 %v1235_v36, %v1118_v54  ;;  %1838 = vrcp.f32 %v1173_v10 }
 0x28a   : > { %v1220_v44 = vsub.f32 2.0, %v1204_v46 }
 0x28b   : > { %1331 = vst [vmem:[%s2801_s5 + $0x68] sm:$0xff] %v1315_v31 }
 0x28c   : > { %v1236_v20 = vmul.f32 %v1837_v26, %v1220_v44 }
 0x28d   : > { %v1055_v14 = vpop.f32.mrf.mxu2 }
 0x28e   : > { %v1266_v41 = vmul.f32 %v2776_v34, %v1236_v20  ;;  %v1267_v5 = vmul.f32 %v2778_v40, %v1236_v20  ;;  %v1120_v8 = vpop.f32.mrf.mxu3 }
 0x28f   : > { %v1839_v28 = vpop.eup %1838  ;;  %v1121_v4 = vadd.f32 %v1120_v8, %v1055_v14 }
 0x290   : > { %1298 = vst [vmem:[%s2795_s13 + $0xe0] sm:$0xff] %v1266_v41  ;;  %v1205_v29 = vmul.f32 %v1839_v28, %v1173_v10 }
 0x291   : > { %1299 = vst [vmem:[%s2795_s13 + $0xe8] sm:$0xff] %v1267_v5  ;;  %v1316_v3 = vmul.f32 %v1236_v20, %v1121_v4 }
 0x292   : > { %v1221_v15 = vsub.f32 2.0, %v1205_v29 }
 0x293   : > { %1332 = vst [vmem:[%s2801_s5 + $0x70] sm:$0xff] %v1316_v3 }
 0x294   : > { %v1237_v34 = vmul.f32 %v1839_v28, %v1221_v15 }
 0x295   : > { %v1058_v40 = vpop.f32.mrf.mxu2 }
 0x296   : > { %v1268_v60 = vmul.f32 %v2784_v16, %v1237_v34  ;;  %v1269_v18 = vmul.f32 %v2786_v55, %v1237_v34  ;;  %v1123_v53 = vpop.f32.mrf.mxu3 }
 0x297   : > { %v1124_v49 = vadd.f32 %v1123_v53, %v1058_v40 }
 0x298   : > { %1300 = vst [vmem:[%s2795_s13 + $0xf0] sm:$0xff] %v1268_v60 }
 0x299   : > { %1301 = vst [vmem:[%s2795_s13 + $0xf8] sm:$0xff] %v1269_v18  ;;  %v1317_v51 = vmul.f32 %v1237_v34, %v1124_v49 }
 0x29a   : > { %1987 = shalt.err (!%p1984_p5)
}
 0x29b   : > { %s2129_s13 = smov 256   ;;  %s2130_s15 = smov 16   ;;  %1333 = vst [vmem:[%s2801_s5 + $0x78] sm:$0xff] %v1317_v51 }
 0x29c   : > { %1622 = dma.vmem_to_hbm [thread:$0]  (%p2296_p11), %s1375_s16, 4096, %s1377_s1, %s1340_s4, %s2129_s13, %s2129_s13, %s2130_s15  }
 0x29d   : > { %s1335_s12 = scalar_lea.sflag [#allocation4], %s2358_s20  ;;  %s2002_s0 = sshra.s32 %s2891_s18, 4  ;;  %s2003_s0 = int_to_ptr.hbm [resolvable:$true] %s2002_s0 }
 0x29e   : > { %s2004_s24 = scalar_lea.hbm %s2003_s0, 128  ;;  %s2008_s14 = scalar_lea.hbm %s3025_s7, 512 }
 0x29f   : > { %p2005_p8 = scmp.ne.s32.totalorder %s2003_s0, %s2004_s24  ;;  %p2009_p1 = scmp.lt.s32.totalorder %s2003_s0, %s3025_s7 }
 0x2a0   : > { %p2010_p12 = scmp.lt.s32.totalorder %s2008_s14, %s2004_s24 }
 0x2a1   : > { %p2006_p9 = pnand %p2005_p8, %p2296_p11 }
 0x2a2   : > { %p2011_p4 = por %p2010_p12, %p2009_p1 }
 0x2a3   : > { %p2007_p2 = pneg %p2006_p9 }
 0x2a5   : > { %p2012_p6 = pnand %p2011_p4, %p2007_p2 }
 0x2a7   : > { %2015 = shalt.err (!%p2012_p6)
}
 0x2a8   : > { %s2131_s20 = smov 128   ;;  %s2132_s5 = smov 8  }
 0x2a9   : > { %1621 = dma.vmem_to_hbm [thread:$0]  (%p2296_p11), %s2889_s30, 2048, %s2891_s18, %s1335_s12, %s2131_s20, %s2131_s20, %s2132_s5  }
 0x2aa PF: > { %s3027_s16 = sld [smem:[#allocation23_spill]] }
 0x2ab   : > { %s3028_s1 = sld [smem:[#allocation19_spill]] }
 0x2b0   : > { %p1646_p7 = scmp.ge.s32.totalorder %s3027_s16, 2 }
 0x2b1   : > { %s1391_s25 = sand.u32 1, %s3028_s1  }
 0x2b2   : > { %p1639_p10 = pnand %p1646_p7, %p2302_p0  ;;  %s1392_s23 = scalar_lea.sflag [#allocation4], %s1391_s25 }
 0x2b4   : > { %p1640_p13 = pneg %p1639_p10 }
 0x2b6   : > { %2073 = dma.done.wait (%p1640_p13), %s1392_s23, 2048  }
 0x2b7   : > { %2075 = vsyncadd (%p1640_p13), %s1392_s23, 4294965248  ;;  %s1402_s11 = scalar_lea.sflag [#allocation12], %s1391_s25 }
 0x2b8   : > { %2077 = dma.done.wait (%p1640_p13), %s1402_s11, 4096  }
 0x2b9   : > { %2079 = vsyncadd (%p1640_p13), %s1402_s11, 4294963200  ;;  %s31_s28 = sadd.s32 1, %s3027_s16   ;;  %s3030_s30 = sld [smem:[#allocation18_spill]] }
 0x2ba   : > { %p28_p3 = scmp.ge.s32.totalorder %s31_s28, 6   ;;  %s3031_s20 = sld [smem:[#allocation30_spill]] }
 0x2bb   : > { %s3032_s29 = sld [smem:[#allocation20_spill]]  ;;  %s3036_s18 = smov %s2086_s19 }
 0x2bc   : > { %s3033_s23 = sld [smem:[#allocation31_spill]]  ;;  %s3038_s21 = smov %s2098_s22 }
 0x2bd   : > { %s3034_s9 = sld [smem:[#allocation26_spill]]  ;;  %s3040_s24 = smov %s2114_s26 }
 0x2be   : > { %s3035_s17 = sld [smem:[#allocation27_spill]]  ;;  %s3041_s25 = smov %s2118_s27 }
 0x2bf   : > { %s3037_s19 = smov %s3030_s30 }
 0x2c0   :  { %30 = sbr.rel (!%p28_p3) target bundleno = 21 (0x15), region = 135 }
 0x2c1   : > { %s3039_s22 = smov %s3032_s29 }
 0x2c3   : > { %s3042_s26 = smov %s3034_s9 }
 0x2c4   : > { %s3043_s27 = smov %s3035_s17 }
 0x2c5   :  { %1408 = vsyncpa [#allocation3], 1 }
 0x2c6   :  { %1410 = vsyncpa [#allocation3 + $0x1], 1 }
 0x2c7   :  { %1411 = vsyncpa [#allocation6], 1 }
 0x2c8   :  { %1413 = vsyncpa [#allocation6 + $0x1], 1 }
 0x2c9   :  { %1414 = vsyncpa [#allocation9], 1 }
 0x2ca   :  { %1416 = vsyncpa [#allocation9 + $0x1], 1 }
 0x2cb   :  { %1417 = vsyncpa [#allocation4], 1 }
 0x2cc   :  { %1419 = vsyncpa [#allocation4 + $0x1], 1 }
 0x2cd   :  { %1420 = vsyncpa [#allocation12], 1 }
 0x2ce   :  { %1422 = vsyncpa [#allocation12 + $0x1], 1 }

</bundles_post_ra>
